<compile_context>
chip_gen: v6e
topology: v6e:2x2x1
jax: 0.10.0
libtpu: 0.0.40
codegen_flags: <defaults>
</compile_context>

<pallas_src>
import math

import jax
import jax.numpy as jnp
from jax.experimental import pallas as pl
from jax.experimental.pallas import tpu as pltpu


# ---------------------------------------------------------------------------
# Fused kernel: one grid step = `bb` batch elements (3 ECE + 3 CCS attentions).
# ---------------------------------------------------------------------------
def _collab_block_kernel(ece_x_ref, ccs_x_ref, w_qv_ref, w_o_ref,
                         ece_o_ref, ccs_o_ref):
    """
    ece_x_ref / ccs_x_ref : (3, bb, N, D)   modality-stacked inputs
    w_qv_ref              : (6, D, 2D)      bf16 slabs [Wqk | Wv] per attention
                            (Wqk = Wq/sqrt(D) @ Wk^T, folded at pack time)
    w_o_ref               : (6, D, D)       bf16 output projections
    ece_o_ref / ccs_o_ref : (3, bb, N, D)   outputs
    Weight rows 0..2 = ECE (geometry, appearance, content), 3..5 = CCS.
    """
    _, bb, n, d = ece_x_ref.shape
    rows = bb * n
    bf16, f32 = jnp.bfloat16, jnp.float32

    def attend(q, kv, v, w_out, resid):
        # q:(bb,nq,d)  kv:(bb,nk,d)  v:(bb,nk,d), all f32.
        # Softmax stays in f32; every MXU matmul takes bf16 operands with
        # f32 accumulation.  Scores use the raw kv source directly because
        # Wk was folded into the query projection.
        nq = q.shape[1]
        s = jnp.einsum('bqd,bkd->bqk', q.astype(bf16), kv.astype(bf16),
                       preferred_element_type=f32)
        s = s - jnp.max(s, axis=-1, keepdims=True)
        p = jnp.exp(s)
        # Exact reciprocal on the tiny (bb, nq, 1) denominator (review item).
        p = p * (1.0 / jnp.sum(p, axis=-1, keepdims=True))
        ctx = jnp.einsum('bqk,bkd->bqd', p.astype(bf16), v.astype(bf16),
                         preferred_element_type=f32)
        out = jnp.dot(ctx.reshape(bb * nq, d).astype(bf16), w_out,
                      preferred_element_type=f32).reshape(bb, nq, d)
        return out + resid

    # --- EgoContextExtractor: per-modality self-attention -------------------
    ece_outs = []
    for m in range(3):
        x = ece_x_ref[m].astype(f32)                          # (bb, n, d)
        # Shared-weight Q'/V projection with batch folded into rows:
        # (bb*n, d) @ (d, 2d) -> one MXU-shaped matmul per modality.
        qv = jnp.dot(x.reshape(rows, d).astype(bf16), w_qv_ref[m],
                     preferred_element_type=f32)              # (rows, 2d)
        q = qv[:, :d].reshape(bb, n, d)
        v = qv[:, d:].reshape(bb, n, d)
        out = attend(q, x, v, w_o_ref[m], x)
        ece_o_ref[m] = out.astype(ece_o_ref.dtype)
        ece_outs.append(out)
    g_out, a_out, c_out = ece_outs

    # --- CrossContextSynthesizer: attend to the other two modalities --------
    # KV concatenation happens on in-VMEM values (no HBM round trip).
    kv_srcs = (jnp.concatenate([a_out, c_out], axis=1),       # geometry
               jnp.concatenate([g_out, c_out], axis=1),       # appearance
               jnp.concatenate([g_out, a_out], axis=1))       # content
    for m in range(3):
        xq = ccs_x_ref[m].astype(f32)                         # (bb, n, d)
        kv = kv_srcs[m]                                       # (bb, 2n, d)
        w = w_qv_ref[3 + m]                                   # (d, 2d)
        q = jnp.dot(xq.reshape(rows, d).astype(bf16), w[:, :d],
                    preferred_element_type=f32).reshape(bb, n, d)
        v = jnp.dot(kv.reshape(bb * 2 * n, d).astype(bf16), w[:, d:],
                    preferred_element_type=f32).reshape(bb, 2 * n, d)
        out = attend(q, kv, v, w_o_ref[3 + m], xq)
        ccs_o_ref[m] = out.astype(ccs_o_ref.dtype)


# ---------------------------------------------------------------------------
# Parameters & packing.
# ---------------------------------------------------------------------------
_ORDER = ("ece_geometry", "ece_appearance", "ece_content",
          "ccs_geometry", "ccs_appearance", "ccs_content")


def _init_attn_params(key, d):
    """Deterministic Wq, Wk, Wv, Wo (fan-in scaled normal)."""
    ks = jax.random.split(key, 4)
    scale = 1.0 / math.sqrt(float(d))
    return tuple(jax.random.normal(k, (d, d), jnp.float32) * scale for k in ks)


def init_collaborative_block_params(key, num_hidden):
    keys = jax.random.split(key, 6)
    return {name: _init_attn_params(k, num_hidden) for name, k in zip(_ORDER, keys)}


def _pack_params(params, d):
    """softmax((xWq)(xkvWk)^T / sqrt(d)) == softmax(x (Wq Wk^T / sqrt(d)) xkv^T),
    so fold scale + Wk into the query projection (exact, zero in-kernel cost);
    the kernel never materialises K.  Stack all six [Wqk | Wv] slabs and Wo's
    and store them in bf16 (MXU-native operands; f32 accumulation in-kernel)."""
    scale = 1.0 / math.sqrt(float(d))
    w_qv, w_o = [], []
    for name in _ORDER:
        wq, wk, wv, wo = params[name]
        w_qk = (wq * scale) @ wk.T                             # (D, D), exact f32
        w_qv.append(jnp.concatenate([w_qk, wv], axis=1))       # (D, 2D)
        w_o.append(wo)                                         # (D, D)
    return (jnp.stack(w_qv, axis=0).astype(jnp.bfloat16),
            jnp.stack(w_o, axis=0).astype(jnp.bfloat16))


# ---------------------------------------------------------------------------
# Wrapper.
# ---------------------------------------------------------------------------
def collaborative_block_forward(params,
                                geometry_ece, appearance_ece, content_ece,
                                geometry_ccs, appearance_ccs, content_ccs):
    """Mirror of CollaborativeBlock.forward (returns the same 6-tuple)."""
    B, N, D = geometry_ece.shape
    dtype = geometry_ece.dtype

    # Batch blocking: bb elements per grid step so shared-weight projections
    # are ~128-256-row matmuls; keep >= 2 parallel grid steps when B >= 2 so
    # both v7x TensorCores get work.
    target_rows = 256
    bb = max(1, min(B, target_rows // max(N, 1)))
    if B >= 2 and pl.cdiv(B, bb) < 2:
        bb = pl.cdiv(B, 2)
    grid = pl.cdiv(B, bb)
    Bp = bb * grid

    def pad_b(x):  # zero-pad batch so the grid divides evenly (outputs sliced)
        return x if Bp == B else jnp.pad(x, ((0, Bp - B), (0, 0), (0, 0)))

    ece_x = jnp.stack([pad_b(geometry_ece), pad_b(appearance_ece),
                       pad_b(content_ece)], axis=0)            # (3, Bp, N, D)
    ccs_x = jnp.stack([pad_b(geometry_ccs), pad_b(appearance_ccs),
                       pad_b(content_ccs)], axis=0)            # (3, Bp, N, D)
    w_qv, w_o = _pack_params(params, D)                        # (6,D,2D), (6,D,D)

    # Explicit VMEM budget (review: re-derive for v7x's 64 MiB/TC and set it).
    itemsize = jnp.dtype(dtype).itemsize
    block_bytes = 4 * 3 * bb * N * D * itemsize                # 2 in + 2 out blocks
    weight_bytes = (6 * D * 2 * D + 6 * D * D) * 2             # bf16 slabs
    vmem_needed = 2 * (block_bytes + weight_bytes)             # double buffered
    vmem_limit = int(min(64 * 2 ** 20, max(32 * 2 ** 20, 8 * vmem_needed)))

    block4 = lambda i: (0, i, 0, 0)
    ece_out, ccs_out = pl.pallas_call(
        _collab_block_kernel,
        out_shape=(jax.ShapeDtypeStruct((3, Bp, N, D), dtype),
                   jax.ShapeDtypeStruct((3, Bp, N, D), dtype)),
        grid=(grid,),
        in_specs=[
            pl.BlockSpec((3, bb, N, D), block4),
            pl.BlockSpec((3, bb, N, D), block4),
            # Constant index_map: slabs fetched once and revisited.
            # TODO(synk): at large D move these to memory_space=pl.ANY with a
            # one-time manual DMA (or single buffering) to avoid paying a
            # double-buffered copy against v7x's 64 MiB VMEM.
            pl.BlockSpec((6, D, 2 * D), lambda i: (0, 0, 0)),
            pl.BlockSpec((6, D, D), lambda i: (0, 0, 0)),
        ],
        out_specs=(
            pl.BlockSpec((3, bb, N, D), block4),
            pl.BlockSpec((3, bb, N, D), block4),
        ),
        compiler_params=pltpu.CompilerParams(
            dimension_semantics=("parallel",),
            vmem_limit_bytes=vmem_limit),
    )(ece_x, ccs_x, w_qv, w_o)

    return (ece_out[0, :B], ece_out[1, :B], ece_out[2, :B],
            ccs_out[0, :B], ccs_out[1, :B], ccs_out[2, :B])


# ---------------------------------------------------------------------------
# References for the self-test.
# ---------------------------------------------------------------------------
def _reference_attention(x_q, x_kv, wq, wk, wv, wo):
    d = x_q.shape[-1]
    q = x_q @ wq
    k = x_kv @ wk
    v = x_kv @ wv
    s = (q @ jnp.swapaxes(k, -1, -2)) / math.sqrt(float(d))
    p = jax.nn.softmax(s, axis=-1)
    return p @ v @ wo + x_q


def _reference_forward(params, g_e, a_e, c_e, g_c, a_c, c_c):
    """Pure f32 math (the 'ground truth')."""
    g_out = _reference_attention(g_e, g_e, *params["ece_geometry"])
    a_out = _reference_attention(a_e, a_e, *params["ece_appearance"])
    c_out = _reference_attention(c_e, c_e, *params["ece_content"])
    return (g_out, a_out, c_out,
            _reference_attention(g_c, jnp.concatenate([a_out, c_out], 1),
                                 *params["ccs_geometry"]),
            _reference_attention(a_c, jnp.concatenate([g_out, c_out], 1),
                                 *params["ccs_appearance"]),
            _reference_attention(c_c, jnp.concatenate([g_out, a_out], 1),
                                 *params["ccs_content"]))


def _emulated_forward(params, g_e, a_e, c_e, g_c, a_c, c_c):
    """Pure-JAX mirror of the kernel's numerics (folded Wqk, bf16 MXU operands,
    f32 softmax).  Lets the self-test use a TIGHT tolerance so wiring bugs
    cannot hide behind the legitimate bf16 slack vs. the f32 reference."""
    d = g_e.shape[-1]
    bf, f32 = jnp.bfloat16, jnp.float32
    w_qv, w_o = _pack_params(params, d)

    def attn(x_q, x_kv, k):
        w = w_qv[k]
        q = jnp.dot(x_q.astype(bf), w[:, :d], preferred_element_type=f32)
        v = jnp.dot(x_kv.astype(bf), w[:, d:], preferred_element_type=f32)
        s = jnp.einsum('bqd,bkd->bqk', q.astype(bf), x_kv.astype(bf),
                       preferred_element_type=f32)
        s = s - jnp.max(s, axis=-1, keepdims=True)
        p = jnp.exp(s)
        p = p * (1.0 / jnp.sum(p, axis=-1, keepdims=True))
        ctx = jnp.einsum('bqk,bkd->bqd', p.astype(bf), v.astype(bf),
                         preferred_element_type=f32)
        return jnp.dot(ctx.astype(bf), w_o[k], preferred_element_type=f32) + x_q

    g_out = attn(g_e, g_e, 0)
    a_out = attn(a_e, a_e, 1)
    c_out = attn(c_e, c_e, 2)
    return (g_out, a_out, c_out,
            attn(g_c, jnp.concatenate([a_out, c_out], 1), 3),
            attn(a_c, jnp.concatenate([g_out, c_out], 1), 4),
            attn(c_c, jnp.concatenate([g_out, a_out], 1), 5))


if __name__ == "__main__":
    batch_size, num_nodes, num_hidden = 2, 8, 32

    root = jax.random.PRNGKey(0)
    k_params, *k_inputs = jax.random.split(root, 7)

    params = init_collaborative_block_params(k_params, num_hidden)

    shape = (batch_size, num_nodes, num_hidden)
    inputs = [jax.random.normal(k, shape, jnp.float32) for k in k_inputs]

    fwd = jax.jit(collaborative_block_forward)
    outs = jax.block_until_ready(fwd(params, *inputs))

    refs_f32 = _reference_forward(params, *inputs)   # exact f32 math
    refs_emu = _emulated_forward(params, *inputs)    # kernel-matched numerics

    assert len(outs) == 6
    for o, r32, remu in zip(outs, refs_f32, refs_emu):
        assert o.shape == shape, o.shape
        assert bool(jnp.all(jnp.isfinite(o)))
        # Tight check vs. the numerics-matched reference: catches any wiring /
        # weight-packing / concat-order bug regardless of bf16 rounding.
        assert bool(jnp.allclose(o, remu, rtol=5e-3, atol=5e-3))
        # Loose check vs. pure-f32 reference: the slack is solely bf16 MXU
        # operand rounding (the softmax reciprocal is exact now).
        assert bool(jnp.allclose(o, r32, rtol=5e-2, atol=5e-2))

    print("KERNEL_OK")
</pallas_src>

<mosaic_0001>
module attributes {stable_mosaic.version = 11 : i64} {
  func.func @_collab_block_kernel(%arg0: i32, %arg1: memref<3x1x8x32xf32, #tpu.memory_space<vmem>>, %arg2: memref<3x1x8x32xf32, #tpu.memory_space<vmem>>, %arg3: memref<6x32x64xbf16, #tpu.memory_space<vmem>>, %arg4: memref<6x32x32xbf16, #tpu.memory_space<vmem>>, %arg5: memref<3x1x8x32xf32, #tpu.memory_space<vmem>>, %arg6: memref<3x1x8x32xf32, #tpu.memory_space<vmem>>) attributes {dimension_semantics = [#tpu.dimension_semantics<parallel>], iteration_bounds = array<i64: 2>, scalar_prefetch = 0 : i64, scratch_operands = 0 : i64, tpu.core_type = #tpu.core_type<tc>, window_params = [{transform_indices = @transform_0, window_bounds = array<i64: 3, 1, 8, 32>}, {transform_indices = @transform_1, window_bounds = array<i64: 3, 1, 8, 32>}, {pipeline_mode = #tpu.pipeline_mode<synchronous>, transform_indices = @transform_2, window_bounds = array<i64: 6, 32, 64>}, {pipeline_mode = #tpu.pipeline_mode<synchronous>, transform_indices = @transform_3, window_bounds = array<i64: 6, 32, 32>}, {transform_indices = @transform_4, window_bounds = array<i64: 3, 1, 8, 32>}, {transform_indices = @transform_5, window_bounds = array<i64: 3, 1, 8, 32>}]} {
    %c0 = arith.constant 0 : index
    %c0_0 = arith.constant 0 : index
    %c0_1 = arith.constant 0 : index
    %c0_2 = arith.constant 0 : index
    %0 = vector.load %arg1[%c0, %c0_0, %c0_1, %c0_2] : memref<3x1x8x32xf32, #tpu.memory_space<vmem>>, vector<1x1x8x32xf32>
    %1 = vector.shape_cast %0 : vector<1x1x8x32xf32> to vector<1x8x32xf32>
    %2 = vector.shape_cast %1 : vector<1x8x32xf32> to vector<8x32xf32>
    %3 = arith.truncf %2 : vector<8x32xf32> to vector<8x32xbf16>
    %c0_3 = arith.constant 0 : index
    %c0_4 = arith.constant 0 : index
    %c0_5 = arith.constant 0 : index
    %4 = vector.load %arg3[%c0_3, %c0_4, %c0_5] : memref<6x32x64xbf16, #tpu.memory_space<vmem>>, vector<1x32x64xbf16>
    %5 = vector.shape_cast %4 : vector<1x32x64xbf16> to vector<32x64xbf16>
    %cst = arith.constant dense<0.000000e+00> : vector<8x64xf32>
    %6 = tpu.matmul %3, %5, %cst {dimension_numbers = #tpu.dot_dimension_numbers<[1], [0], [0], [1], [0, 0, 1, 1], [], []>} : vector<8x32xbf16>, vector<32x64xbf16>, vector<8x64xf32> -> vector<8x64xf32>
    %7 = vector.extract_strided_slice %6 {offsets = [0, 0], sizes = [8, 32], strides = [1, 1]} : vector<8x64xf32> to vector<8x32xf32>
    %8 = vector.shape_cast %7 : vector<8x32xf32> to vector<1x8x32xf32>
    %9 = vector.extract_strided_slice %6 {offsets = [0, 32], sizes = [8, 32], strides = [1, 1]} : vector<8x64xf32> to vector<8x32xf32>
    %10 = vector.shape_cast %9 : vector<8x32xf32> to vector<1x8x32xf32>
    %c0_6 = arith.constant 0 : index
    %c0_7 = arith.constant 0 : index
    %c0_8 = arith.constant 0 : index
    %11 = vector.load %arg4[%c0_6, %c0_7, %c0_8] : memref<6x32x32xbf16, #tpu.memory_space<vmem>>, vector<1x32x32xbf16>
    %12 = vector.shape_cast %11 : vector<1x32x32xbf16> to vector<32x32xbf16>
    %13 = arith.truncf %8 : vector<1x8x32xf32> to vector<1x8x32xbf16>
    %14 = arith.truncf %1 : vector<1x8x32xf32> to vector<1x8x32xbf16>
    "tpu.trace_start"() <{level = 10 : i32, message = "bqd,bkd->bqk"}> : () -> ()
    %cst_9 = arith.constant dense<0.000000e+00> : vector<1x8x8xf32>
    %15 = tpu.matmul %13, %14, %cst_9 {dimension_numbers = #tpu.dot_dimension_numbers<[2], [2], [1], [1], [0, 0, 0, 1, 1, 1], [0], [0]>} : vector<1x8x32xbf16>, vector<1x8x32xbf16>, vector<1x8x8xf32> -> vector<1x8x8xf32>
    "tpu.trace_stop"() : () -> ()
    %cst_10 = arith.constant dense<0xFF800000> : vector<1x8xf32>
    %16 = vector.multi_reduction <maximumf>, %15, %cst_10 [2] : vector<1x8x8xf32> to vector<1x8xf32>
    %17 = vector.shape_cast %16 : vector<1x8xf32> to vector<1x8x1xf32>
    %18 = vector.broadcast %17 : vector<1x8x1xf32> to vector<1x8x8xf32>
    %19 = arith.subf %15, %18 : vector<1x8x8xf32>
    %20 = math.exp %19 : vector<1x8x8xf32>
    %cst_11 = arith.constant dense<0.000000e+00> : vector<1x8xf32>
    %21 = vector.multi_reduction <add>, %20, %cst_11 [2] : vector<1x8x8xf32> to vector<1x8xf32>
    %22 = vector.shape_cast %21 : vector<1x8xf32> to vector<1x8x1xf32>
    %cst_12 = arith.constant 1.000000e+00 : f32
    %23 = vector.broadcast %cst_12 : f32 to vector<1x8x1xf32>
    %24 = arith.divf %23, %22 : vector<1x8x1xf32>
    %25 = vector.broadcast %24 : vector<1x8x1xf32> to vector<1x8x8xf32>
    %26 = arith.mulf %20, %25 : vector<1x8x8xf32>
    %27 = arith.truncf %26 : vector<1x8x8xf32> to vector<1x8x8xbf16>
    %28 = arith.truncf %10 : vector<1x8x32xf32> to vector<1x8x32xbf16>
    "tpu.trace_start"() <{level = 10 : i32, message = "bqk,bkd->bqd"}> : () -> ()
    %cst_13 = arith.constant dense<0.000000e+00> : vector<1x8x32xf32>
    %29 = tpu.matmul %27, %28, %cst_13 {dimension_numbers = #tpu.dot_dimension_numbers<[2], [1], [1], [2], [0, 0, 0, 1, 1, 2], [0], [0]>} : vector<1x8x8xbf16>, vector<1x8x32xbf16>, vector<1x8x32xf32> -> vector<1x8x32xf32>
    "tpu.trace_stop"() : () -> ()
    %30 = vector.shape_cast %29 : vector<1x8x32xf32> to vector<8x32xf32>
    %31 = arith.truncf %30 : vector<8x32xf32> to vector<8x32xbf16>
    %cst_14 = arith.constant dense<0.000000e+00> : vector<8x32xf32>
    %32 = tpu.matmul %31, %12, %cst_14 {dimension_numbers = #tpu.dot_dimension_numbers<[1], [0], [0], [1], [0, 0, 1, 1], [], []>} : vector<8x32xbf16>, vector<32x32xbf16>, vector<8x32xf32> -> vector<8x32xf32>
    %33 = vector.shape_cast %32 : vector<8x32xf32> to vector<1x8x32xf32>
    %34 = arith.addf %33, %1 : vector<1x8x32xf32>
    %c0_15 = arith.constant 0 : index
    %c0_16 = arith.constant 0 : index
    %c0_17 = arith.constant 0 : index
    %c0_18 = arith.constant 0 : index
    %35 = vector.load %arg5[%c0_15, %c0_16, %c0_17, %c0_18] : memref<3x1x8x32xf32, #tpu.memory_space<vmem>>, vector<1x1x8x32xf32>
    %36 = vector.shape_cast %35 : vector<1x1x8x32xf32> to vector<1x8x32xf32>
    %37 = vector.shape_cast %34 : vector<1x8x32xf32> to vector<1x1x8x32xf32>
    tpu.vector_store %arg5[%c0_15, %c0_16, %c0_17, %c0_18], %37 {strides = array<i32>} : memref<3x1x8x32xf32, #tpu.memory_space<vmem>>, vector<1x1x8x32xf32>,
    %c1 = arith.constant 1 : index
    %c0_19 = arith.constant 0 : index
    %c0_20 = arith.constant 0 : index
    %c0_21 = arith.constant 0 : index
    %38 = vector.load %arg1[%c1, %c0_19, %c0_20, %c0_21] : memref<3x1x8x32xf32, #tpu.memory_space<vmem>>, vector<1x1x8x32xf32>
    %39 = vector.shape_cast %38 : vector<1x1x8x32xf32> to vector<1x8x32xf32>
    %40 = vector.shape_cast %39 : vector<1x8x32xf32> to vector<8x32xf32>
    %41 = arith.truncf %40 : vector<8x32xf32> to vector<8x32xbf16>
    %c1_22 = arith.constant 1 : index
    %c0_23 = arith.constant 0 : index
    %c0_24 = arith.constant 0 : index
    %42 = vector.load %arg3[%c1_22, %c0_23, %c0_24] : memref<6x32x64xbf16, #tpu.memory_space<vmem>>, vector<1x32x64xbf16>
    %43 = vector.shape_cast %42 : vector<1x32x64xbf16> to vector<32x64xbf16>
    %cst_25 = arith.constant dense<0.000000e+00> : vector<8x64xf32>
    %44 = tpu.matmul %41, %43, %cst_25 {dimension_numbers = #tpu.dot_dimension_numbers<[1], [0], [0], [1], [0, 0, 1, 1], [], []>} : vector<8x32xbf16>, vector<32x64xbf16>, vector<8x64xf32> -> vector<8x64xf32>
    %45 = vector.extract_strided_slice %44 {offsets = [0, 0], sizes = [8, 32], strides = [1, 1]} : vector<8x64xf32> to vector<8x32xf32>
    %46 = vector.shape_cast %45 : vector<8x32xf32> to vector<1x8x32xf32>
    %47 = vector.extract_strided_slice %44 {offsets = [0, 32], sizes = [8, 32], strides = [1, 1]} : vector<8x64xf32> to vector<8x32xf32>
    %48 = vector.shape_cast %47 : vector<8x32xf32> to vector<1x8x32xf32>
    %c1_26 = arith.constant 1 : index
    %c0_27 = arith.constant 0 : index
    %c0_28 = arith.constant 0 : index
    %49 = vector.load %arg4[%c1_26, %c0_27, %c0_28] : memref<6x32x32xbf16, #tpu.memory_space<vmem>>, vector<1x32x32xbf16>
    %50 = vector.shape_cast %49 : vector<1x32x32xbf16> to vector<32x32xbf16>
    %51 = arith.truncf %46 : vector<1x8x32xf32> to vector<1x8x32xbf16>
    %52 = arith.truncf %39 : vector<1x8x32xf32> to vector<1x8x32xbf16>
    "tpu.trace_start"() <{level = 10 : i32, message = "bqd,bkd->bqk"}> : () -> ()
    %cst_29 = arith.constant dense<0.000000e+00> : vector<1x8x8xf32>
    %53 = tpu.matmul %51, %52, %cst_29 {dimension_numbers = #tpu.dot_dimension_numbers<[2], [2], [1], [1], [0, 0, 0, 1, 1, 1], [0], [0]>} : vector<1x8x32xbf16>, vector<1x8x32xbf16>, vector<1x8x8xf32> -> vector<1x8x8xf32>
    "tpu.trace_stop"() : () -> ()
    %cst_30 = arith.constant dense<0xFF800000> : vector<1x8xf32>
    %54 = vector.multi_reduction <maximumf>, %53, %cst_30 [2] : vector<1x8x8xf32> to vector<1x8xf32>
    %55 = vector.shape_cast %54 : vector<1x8xf32> to vector<1x8x1xf32>
    %56 = vector.broadcast %55 : vector<1x8x1xf32> to vector<1x8x8xf32>
    %57 = arith.subf %53, %56 : vector<1x8x8xf32>
    %58 = math.exp %57 : vector<1x8x8xf32>
    %cst_31 = arith.constant dense<0.000000e+00> : vector<1x8xf32>
    %59 = vector.multi_reduction <add>, %58, %cst_31 [2] : vector<1x8x8xf32> to vector<1x8xf32>
    %60 = vector.shape_cast %59 : vector<1x8xf32> to vector<1x8x1xf32>
    %cst_32 = arith.constant 1.000000e+00 : f32
    %61 = vector.broadcast %cst_32 : f32 to vector<1x8x1xf32>
    %62 = arith.divf %61, %60 : vector<1x8x1xf32>
    %63 = vector.broadcast %62 : vector<1x8x1xf32> to vector<1x8x8xf32>
    %64 = arith.mulf %58, %63 : vector<1x8x8xf32>
    %65 = arith.truncf %64 : vector<1x8x8xf32> to vector<1x8x8xbf16>
    %66 = arith.truncf %48 : vector<1x8x32xf32> to vector<1x8x32xbf16>
    "tpu.trace_start"() <{level = 10 : i32, message = "bqk,bkd->bqd"}> : () -> ()
    %cst_33 = arith.constant dense<0.000000e+00> : vector<1x8x32xf32>
    %67 = tpu.matmul %65, %66, %cst_33 {dimension_numbers = #tpu.dot_dimension_numbers<[2], [1], [1], [2], [0, 0, 0, 1, 1, 2], [0], [0]>} : vector<1x8x8xbf16>, vector<1x8x32xbf16>, vector<1x8x32xf32> -> vector<1x8x32xf32>
    "tpu.trace_stop"() : () -> ()
    %68 = vector.shape_cast %67 : vector<1x8x32xf32> to vector<8x32xf32>
    %69 = arith.truncf %68 : vector<8x32xf32> to vector<8x32xbf16>
    %cst_34 = arith.constant dense<0.000000e+00> : vector<8x32xf32>
    %70 = tpu.matmul %69, %50, %cst_34 {dimension_numbers = #tpu.dot_dimension_numbers<[1], [0], [0], [1], [0, 0, 1, 1], [], []>} : vector<8x32xbf16>, vector<32x32xbf16>, vector<8x32xf32> -> vector<8x32xf32>
    %71 = vector.shape_cast %70 : vector<8x32xf32> to vector<1x8x32xf32>
    %72 = arith.addf %71, %39 : vector<1x8x32xf32>
    %c1_35 = arith.constant 1 : index
    %c0_36 = arith.constant 0 : index
    %c0_37 = arith.constant 0 : index
    %c0_38 = arith.constant 0 : index
    %73 = vector.load %arg5[%c1_35, %c0_36, %c0_37, %c0_38] : memref<3x1x8x32xf32, #tpu.memory_space<vmem>>, vector<1x1x8x32xf32>
    %74 = vector.shape_cast %73 : vector<1x1x8x32xf32> to vector<1x8x32xf32>
    %75 = vector.shape_cast %72 : vector<1x8x32xf32> to vector<1x1x8x32xf32>
    tpu.vector_store %arg5[%c1_35, %c0_36, %c0_37, %c0_38], %75 {strides = array<i32>} : memref<3x1x8x32xf32, #tpu.memory_space<vmem>>, vector<1x1x8x32xf32>,
    %c2 = arith.constant 2 : index
    %c0_39 = arith.constant 0 : index
    %c0_40 = arith.constant 0 : index
    %c0_41 = arith.constant 0 : index
    %76 = vector.load %arg1[%c2, %c0_39, %c0_40, %c0_41] : memref<3x1x8x32xf32, #tpu.memory_space<vmem>>, vector<1x1x8x32xf32>
    %77 = vector.shape_cast %76 : vector<1x1x8x32xf32> to vector<1x8x32xf32>
    %78 = vector.shape_cast %77 : vector<1x8x32xf32> to vector<8x32xf32>
    %79 = arith.truncf %78 : vector<8x32xf32> to vector<8x32xbf16>
    %c2_42 = arith.constant 2 : index
    %c0_43 = arith.constant 0 : index
    %c0_44 = arith.constant 0 : index
    %80 = vector.load %arg3[%c2_42, %c0_43, %c0_44] : memref<6x32x64xbf16, #tpu.memory_space<vmem>>, vector<1x32x64xbf16>
    %81 = vector.shape_cast %80 : vector<1x32x64xbf16> to vector<32x64xbf16>
    %cst_45 = arith.constant dense<0.000000e+00> : vector<8x64xf32>
    %82 = tpu.matmul %79, %81, %cst_45 {dimension_numbers = #tpu.dot_dimension_numbers<[1], [0], [0], [1], [0, 0, 1, 1], [], []>} : vector<8x32xbf16>, vector<32x64xbf16>, vector<8x64xf32> -> vector<8x64xf32>
    %83 = vector.extract_strided_slice %82 {offsets = [0, 0], sizes = [8, 32], strides = [1, 1]} : vector<8x64xf32> to vector<8x32xf32>
    %84 = vector.shape_cast %83 : vector<8x32xf32> to vector<1x8x32xf32>
    %85 = vector.extract_strided_slice %82 {offsets = [0, 32], sizes = [8, 32], strides = [1, 1]} : vector<8x64xf32> to vector<8x32xf32>
    %86 = vector.shape_cast %85 : vector<8x32xf32> to vector<1x8x32xf32>
    %c2_46 = arith.constant 2 : index
    %c0_47 = arith.constant 0 : index
    %c0_48 = arith.constant 0 : index
    %87 = vector.load %arg4[%c2_46, %c0_47, %c0_48] : memref<6x32x32xbf16, #tpu.memory_space<vmem>>, vector<1x32x32xbf16>
    %88 = vector.shape_cast %87 : vector<1x32x32xbf16> to vector<32x32xbf16>
    %89 = arith.truncf %84 : vector<1x8x32xf32> to vector<1x8x32xbf16>
    %90 = arith.truncf %77 : vector<1x8x32xf32> to vector<1x8x32xbf16>
    "tpu.trace_start"() <{level = 10 : i32, message = "bqd,bkd->bqk"}> : () -> ()
    %cst_49 = arith.constant dense<0.000000e+00> : vector<1x8x8xf32>
    %91 = tpu.matmul %89, %90, %cst_49 {dimension_numbers = #tpu.dot_dimension_numbers<[2], [2], [1], [1], [0, 0, 0, 1, 1, 1], [0], [0]>} : vector<1x8x32xbf16>, vector<1x8x32xbf16>, vector<1x8x8xf32> -> vector<1x8x8xf32>
    "tpu.trace_stop"() : () -> ()
    %cst_50 = arith.constant dense<0xFF800000> : vector<1x8xf32>
    %92 = vector.multi_reduction <maximumf>, %91, %cst_50 [2] : vector<1x8x8xf32> to vector<1x8xf32>
    %93 = vector.shape_cast %92 : vector<1x8xf32> to vector<1x8x1xf32>
    %94 = vector.broadcast %93 : vector<1x8x1xf32> to vector<1x8x8xf32>
    %95 = arith.subf %91, %94 : vector<1x8x8xf32>
    %96 = math.exp %95 : vector<1x8x8xf32>
    %cst_51 = arith.constant dense<0.000000e+00> : vector<1x8xf32>
    %97 = vector.multi_reduction <add>, %96, %cst_51 [2] : vector<1x8x8xf32> to vector<1x8xf32>
    %98 = vector.shape_cast %97 : vector<1x8xf32> to vector<1x8x1xf32>
    %cst_52 = arith.constant 1.000000e+00 : f32
    %99 = vector.broadcast %cst_52 : f32 to vector<1x8x1xf32>
    %100 = arith.divf %99, %98 : vector<1x8x1xf32>
    %101 = vector.broadcast %100 : vector<1x8x1xf32> to vector<1x8x8xf32>
    %102 = arith.mulf %96, %101 : vector<1x8x8xf32>
    %103 = arith.truncf %102 : vector<1x8x8xf32> to vector<1x8x8xbf16>
    %104 = arith.truncf %86 : vector<1x8x32xf32> to vector<1x8x32xbf16>
    "tpu.trace_start"() <{level = 10 : i32, message = "bqk,bkd->bqd"}> : () -> ()
    %cst_53 = arith.constant dense<0.000000e+00> : vector<1x8x32xf32>
    %105 = tpu.matmul %103, %104, %cst_53 {dimension_numbers = #tpu.dot_dimension_numbers<[2], [1], [1], [2], [0, 0, 0, 1, 1, 2], [0], [0]>} : vector<1x8x8xbf16>, vector<1x8x32xbf16>, vector<1x8x32xf32> -> vector<1x8x32xf32>
    "tpu.trace_stop"() : () -> ()
    %106 = vector.shape_cast %105 : vector<1x8x32xf32> to vector<8x32xf32>
    %107 = arith.truncf %106 : vector<8x32xf32> to vector<8x32xbf16>
    %cst_54 = arith.constant dense<0.000000e+00> : vector<8x32xf32>
    %108 = tpu.matmul %107, %88, %cst_54 {dimension_numbers = #tpu.dot_dimension_numbers<[1], [0], [0], [1], [0, 0, 1, 1], [], []>} : vector<8x32xbf16>, vector<32x32xbf16>, vector<8x32xf32> -> vector<8x32xf32>
    %109 = vector.shape_cast %108 : vector<8x32xf32> to vector<1x8x32xf32>
    %110 = arith.addf %109, %77 : vector<1x8x32xf32>
    %c2_55 = arith.constant 2 : index
    %c0_56 = arith.constant 0 : index
    %c0_57 = arith.constant 0 : index
    %c0_58 = arith.constant 0 : index
    %111 = vector.load %arg5[%c2_55, %c0_56, %c0_57, %c0_58] : memref<3x1x8x32xf32, #tpu.memory_space<vmem>>, vector<1x1x8x32xf32>
    %112 = vector.shape_cast %111 : vector<1x1x8x32xf32> to vector<1x8x32xf32>
    %113 = vector.shape_cast %110 : vector<1x8x32xf32> to vector<1x1x8x32xf32>
    tpu.vector_store %arg5[%c2_55, %c0_56, %c0_57, %c0_58], %113 {strides = array<i32>} : memref<3x1x8x32xf32, #tpu.memory_space<vmem>>, vector<1x1x8x32xf32>,
    %114 = tpu.concatenate %72, %110 in 1 : vector<1x8x32xf32>, vector<1x8x32xf32> -> vector<1x16x32xf32>
    %115 = tpu.concatenate %34, %110 in 1 : vector<1x8x32xf32>, vector<1x8x32xf32> -> vector<1x16x32xf32>
    %116 = tpu.concatenate %34, %72 in 1 : vector<1x8x32xf32>, vector<1x8x32xf32> -> vector<1x16x32xf32>
    %c0_59 = arith.constant 0 : index
    %c0_60 = arith.constant 0 : index
    %c0_61 = arith.constant 0 : index
    %c0_62 = arith.constant 0 : index
    %117 = vector.load %arg2[%c0_59, %c0_60, %c0_61, %c0_62] : memref<3x1x8x32xf32, #tpu.memory_space<vmem>>, vector<1x1x8x32xf32>
    %118 = vector.shape_cast %117 : vector<1x1x8x32xf32> to vector<1x8x32xf32>
    %c3 = arith.constant 3 : index
    %c0_63 = arith.constant 0 : index
    %c0_64 = arith.constant 0 : index
    %119 = vector.load %arg3[%c3, %c0_63, %c0_64] : memref<6x32x64xbf16, #tpu.memory_space<vmem>>, vector<1x32x64xbf16>
    %120 = vector.shape_cast %119 : vector<1x32x64xbf16> to vector<32x64xbf16>
    %121 = vector.shape_cast %118 : vector<1x8x32xf32> to vector<8x32xf32>
    %122 = arith.truncf %121 : vector<8x32xf32> to vector<8x32xbf16>
    %123 = vector.extract_strided_slice %120 {offsets = [0, 0], sizes = [32, 32], strides = [1, 1]} : vector<32x64xbf16> to vector<32x32xbf16>
    %cst_65 = arith.constant dense<0.000000e+00> : vector<8x32xf32>
    %124 = tpu.matmul %122, %123, %cst_65 {dimension_numbers = #tpu.dot_dimension_numbers<[1], [0], [0], [1], [0, 0, 1, 1], [], []>} : vector<8x32xbf16>, vector<32x32xbf16>, vector<8x32xf32> -> vector<8x32xf32>
    %125 = vector.shape_cast %124 : vector<8x32xf32> to vector<1x8x32xf32>
    %126 = vector.shape_cast %114 : vector<1x16x32xf32> to vector<16x32xf32>
    %127 = arith.truncf %126 : vector<16x32xf32> to vector<16x32xbf16>
    %128 = vector.extract_strided_slice %120 {offsets = [0, 32], sizes = [32, 32], strides = [1, 1]} : vector<32x64xbf16> to vector<32x32xbf16>
    %cst_66 = arith.constant dense<0.000000e+00> : vector<16x32xf32>
    %129 = tpu.matmul %127, %128, %cst_66 {dimension_numbers = #tpu.dot_dimension_numbers<[1], [0], [0], [1], [0, 0, 1, 1], [], []>} : vector<16x32xbf16>, vector<32x32xbf16>, vector<16x32xf32> -> vector<16x32xf32>
    %130 = vector.shape_cast %129 : vector<16x32xf32> to vector<1x16x32xf32>
    %c3_67 = arith.constant 3 : index
    %c0_68 = arith.constant 0 : index
    %c0_69 = arith.constant 0 : index
    %131 = vector.load %arg4[%c3_67, %c0_68, %c0_69] : memref<6x32x32xbf16, #tpu.memory_space<vmem>>, vector<1x32x32xbf16>
    %132 = vector.shape_cast %131 : vector<1x32x32xbf16> to vector<32x32xbf16>
    %133 = arith.truncf %125 : vector<1x8x32xf32> to vector<1x8x32xbf16>
    %134 = arith.truncf %114 : vector<1x16x32xf32> to vector<1x16x32xbf16>
    "tpu.trace_start"() <{level = 10 : i32, message = "bqd,bkd->bqk"}> : () -> ()
    %cst_70 = arith.constant dense<0.000000e+00> : vector<1x8x16xf32>
    %135 = tpu.matmul %133, %134, %cst_70 {dimension_numbers = #tpu.dot_dimension_numbers<[2], [2], [1], [1], [0, 0, 0, 1, 1, 1], [0], [0]>} : vector<1x8x32xbf16>, vector<1x16x32xbf16>, vector<1x8x16xf32> -> vector<1x8x16xf32>
    "tpu.trace_stop"() : () -> ()
    %cst_71 = arith.constant dense<0xFF800000> : vector<1x8xf32>
    %136 = vector.multi_reduction <maximumf>, %135, %cst_71 [2] : vector<1x8x16xf32> to vector<1x8xf32>
    %137 = vector.shape_cast %136 : vector<1x8xf32> to vector<1x8x1xf32>
    %138 = vector.broadcast %137 : vector<1x8x1xf32> to vector<1x8x16xf32>
    %139 = arith.subf %135, %138 : vector<1x8x16xf32>
    %140 = math.exp %139 : vector<1x8x16xf32>
    %cst_72 = arith.constant dense<0.000000e+00> : vector<1x8xf32>
    %141 = vector.multi_reduction <add>, %140, %cst_72 [2] : vector<1x8x16xf32> to vector<1x8xf32>
    %142 = vector.shape_cast %141 : vector<1x8xf32> to vector<1x8x1xf32>
    %cst_73 = arith.constant 1.000000e+00 : f32
    %143 = vector.broadcast %cst_73 : f32 to vector<1x8x1xf32>
    %144 = arith.divf %143, %142 : vector<1x8x1xf32>
    %145 = vector.broadcast %144 : vector<1x8x1xf32> to vector<1x8x16xf32>
    %146 = arith.mulf %140, %145 : vector<1x8x16xf32>
    %147 = arith.truncf %146 : vector<1x8x16xf32> to vector<1x8x16xbf16>
    %148 = arith.truncf %130 : vector<1x16x32xf32> to vector<1x16x32xbf16>
    "tpu.trace_start"() <{level = 10 : i32, message = "bqk,bkd->bqd"}> : () -> ()
    %cst_74 = arith.constant dense<0.000000e+00> : vector<1x8x32xf32>
    %149 = tpu.matmul %147, %148, %cst_74 {dimension_numbers = #tpu.dot_dimension_numbers<[2], [1], [1], [2], [0, 0, 0, 1, 1, 2], [0], [0]>} : vector<1x8x16xbf16>, vector<1x16x32xbf16>, vector<1x8x32xf32> -> vector<1x8x32xf32>
    "tpu.trace_stop"() : () -> ()
    %150 = vector.shape_cast %149 : vector<1x8x32xf32> to vector<8x32xf32>
    %151 = arith.truncf %150 : vector<8x32xf32> to vector<8x32xbf16>
    %cst_75 = arith.constant dense<0.000000e+00> : vector<8x32xf32>
    %152 = tpu.matmul %151, %132, %cst_75 {dimension_numbers = #tpu.dot_dimension_numbers<[1], [0], [0], [1], [0, 0, 1, 1], [], []>} : vector<8x32xbf16>, vector<32x32xbf16>, vector<8x32xf32> -> vector<8x32xf32>
    %153 = vector.shape_cast %152 : vector<8x32xf32> to vector<1x8x32xf32>
    %154 = arith.addf %153, %118 : vector<1x8x32xf32>
    %c0_76 = arith.constant 0 : index
    %c0_77 = arith.constant 0 : index
    %c0_78 = arith.constant 0 : index
    %c0_79 = arith.constant 0 : index
    %155 = vector.load %arg6[%c0_76, %c0_77, %c0_78, %c0_79] : memref<3x1x8x32xf32, #tpu.memory_space<vmem>>, vector<1x1x8x32xf32>
    %156 = vector.shape_cast %155 : vector<1x1x8x32xf32> to vector<1x8x32xf32>
    %157 = vector.shape_cast %154 : vector<1x8x32xf32> to vector<1x1x8x32xf32>
    tpu.vector_store %arg6[%c0_76, %c0_77, %c0_78, %c0_79], %157 {strides = array<i32>} : memref<3x1x8x32xf32, #tpu.memory_space<vmem>>, vector<1x1x8x32xf32>,
    %c1_80 = arith.constant 1 : index
    %c0_81 = arith.constant 0 : index
    %c0_82 = arith.constant 0 : index
    %c0_83 = arith.constant 0 : index
    %158 = vector.load %arg2[%c1_80, %c0_81, %c0_82, %c0_83] : memref<3x1x8x32xf32, #tpu.memory_space<vmem>>, vector<1x1x8x32xf32>
    %159 = vector.shape_cast %158 : vector<1x1x8x32xf32> to vector<1x8x32xf32>
    %c4 = arith.constant 4 : index
    %c0_84 = arith.constant 0 : index
    %c0_85 = arith.constant 0 : index
    %160 = vector.load %arg3[%c4, %c0_84, %c0_85] : memref<6x32x64xbf16, #tpu.memory_space<vmem>>, vector<1x32x64xbf16>
    %161 = vector.shape_cast %160 : vector<1x32x64xbf16> to vector<32x64xbf16>
    %162 = vector.shape_cast %159 : vector<1x8x32xf32> to vector<8x32xf32>
    %163 = arith.truncf %162 : vector<8x32xf32> to vector<8x32xbf16>
    %164 = vector.extract_strided_slice %161 {offsets = [0, 0], sizes = [32, 32], strides = [1, 1]} : vector<32x64xbf16> to vector<32x32xbf16>
    %cst_86 = arith.constant dense<0.000000e+00> : vector<8x32xf32>
    %165 = tpu.matmul %163, %164, %cst_86 {dimension_numbers = #tpu.dot_dimension_numbers<[1], [0], [0], [1], [0, 0, 1, 1], [], []>} : vector<8x32xbf16>, vector<32x32xbf16>, vector<8x32xf32> -> vector<8x32xf32>
    %166 = vector.shape_cast %165 : vector<8x32xf32> to vector<1x8x32xf32>
    %167 = vector.shape_cast %115 : vector<1x16x32xf32> to vector<16x32xf32>
    %168 = arith.truncf %167 : vector<16x32xf32> to vector<16x32xbf16>
    %169 = vector.extract_strided_slice %161 {offsets = [0, 32], sizes = [32, 32], strides = [1, 1]} : vector<32x64xbf16> to vector<32x32xbf16>
    %cst_87 = arith.constant dense<0.000000e+00> : vector<16x32xf32>
    %170 = tpu.matmul %168, %169, %cst_87 {dimension_numbers = #tpu.dot_dimension_numbers<[1], [0], [0], [1], [0, 0, 1, 1], [], []>} : vector<16x32xbf16>, vector<32x32xbf16>, vector<16x32xf32> -> vector<16x32xf32>
    %171 = vector.shape_cast %170 : vector<16x32xf32> to vector<1x16x32xf32>
    %c4_88 = arith.constant 4 : index
    %c0_89 = arith.constant 0 : index
    %c0_90 = arith.constant 0 : index
    %172 = vector.load %arg4[%c4_88, %c0_89, %c0_90] : memref<6x32x32xbf16, #tpu.memory_space<vmem>>, vector<1x32x32xbf16>
    %173 = vector.shape_cast %172 : vector<1x32x32xbf16> to vector<32x32xbf16>
    %174 = arith.truncf %166 : vector<1x8x32xf32> to vector<1x8x32xbf16>
    %175 = arith.truncf %115 : vector<1x16x32xf32> to vector<1x16x32xbf16>
    "tpu.trace_start"() <{level = 10 : i32, message = "bqd,bkd->bqk"}> : () -> ()
    %cst_91 = arith.constant dense<0.000000e+00> : vector<1x8x16xf32>
    %176 = tpu.matmul %174, %175, %cst_91 {dimension_numbers = #tpu.dot_dimension_numbers<[2], [2], [1], [1], [0, 0, 0, 1, 1, 1], [0], [0]>} : vector<1x8x32xbf16>, vector<1x16x32xbf16>, vector<1x8x16xf32> -> vector<1x8x16xf32>
    "tpu.trace_stop"() : () -> ()
    %cst_92 = arith.constant dense<0xFF800000> : vector<1x8xf32>
    %177 = vector.multi_reduction <maximumf>, %176, %cst_92 [2] : vector<1x8x16xf32> to vector<1x8xf32>
    %178 = vector.shape_cast %177 : vector<1x8xf32> to vector<1x8x1xf32>
    %179 = vector.broadcast %178 : vector<1x8x1xf32> to vector<1x8x16xf32>
    %180 = arith.subf %176, %179 : vector<1x8x16xf32>
    %181 = math.exp %180 : vector<1x8x16xf32>
    %cst_93 = arith.constant dense<0.000000e+00> : vector<1x8xf32>
    %182 = vector.multi_reduction <add>, %181, %cst_93 [2] : vector<1x8x16xf32> to vector<1x8xf32>
    %183 = vector.shape_cast %182 : vector<1x8xf32> to vector<1x8x1xf32>
    %cst_94 = arith.constant 1.000000e+00 : f32
    %184 = vector.broadcast %cst_94 : f32 to vector<1x8x1xf32>
    %185 = arith.divf %184, %183 : vector<1x8x1xf32>
    %186 = vector.broadcast %185 : vector<1x8x1xf32> to vector<1x8x16xf32>
    %187 = arith.mulf %181, %186 : vector<1x8x16xf32>
    %188 = arith.truncf %187 : vector<1x8x16xf32> to vector<1x8x16xbf16>
    %189 = arith.truncf %171 : vector<1x16x32xf32> to vector<1x16x32xbf16>
    "tpu.trace_start"() <{level = 10 : i32, message = "bqk,bkd->bqd"}> : () -> ()
    %cst_95 = arith.constant dense<0.000000e+00> : vector<1x8x32xf32>
    %190 = tpu.matmul %188, %189, %cst_95 {dimension_numbers = #tpu.dot_dimension_numbers<[2], [1], [1], [2], [0, 0, 0, 1, 1, 2], [0], [0]>} : vector<1x8x16xbf16>, vector<1x16x32xbf16>, vector<1x8x32xf32> -> vector<1x8x32xf32>
    "tpu.trace_stop"() : () -> ()
    %191 = vector.shape_cast %190 : vector<1x8x32xf32> to vector<8x32xf32>
    %192 = arith.truncf %191 : vector<8x32xf32> to vector<8x32xbf16>
    %cst_96 = arith.constant dense<0.000000e+00> : vector<8x32xf32>
    %193 = tpu.matmul %192, %173, %cst_96 {dimension_numbers = #tpu.dot_dimension_numbers<[1], [0], [0], [1], [0, 0, 1, 1], [], []>} : vector<8x32xbf16>, vector<32x32xbf16>, vector<8x32xf32> -> vector<8x32xf32>
    %194 = vector.shape_cast %193 : vector<8x32xf32> to vector<1x8x32xf32>
    %195 = arith.addf %194, %159 : vector<1x8x32xf32>
    %c1_97 = arith.constant 1 : index
    %c0_98 = arith.constant 0 : index
    %c0_99 = arith.constant 0 : index
    %c0_100 = arith.constant 0 : index
    %196 = vector.load %arg6[%c1_97, %c0_98, %c0_99, %c0_100] : memref<3x1x8x32xf32, #tpu.memory_space<vmem>>, vector<1x1x8x32xf32>
    %197 = vector.shape_cast %196 : vector<1x1x8x32xf32> to vector<1x8x32xf32>
    %198 = vector.shape_cast %195 : vector<1x8x32xf32> to vector<1x1x8x32xf32>
    tpu.vector_store %arg6[%c1_97, %c0_98, %c0_99, %c0_100], %198 {strides = array<i32>} : memref<3x1x8x32xf32, #tpu.memory_space<vmem>>, vector<1x1x8x32xf32>,
    %c2_101 = arith.constant 2 : index
    %c0_102 = arith.constant 0 : index
    %c0_103 = arith.constant 0 : index
    %c0_104 = arith.constant 0 : index
    %199 = vector.load %arg2[%c2_101, %c0_102, %c0_103, %c0_104] : memref<3x1x8x32xf32, #tpu.memory_space<vmem>>, vector<1x1x8x32xf32>
    %200 = vector.shape_cast %199 : vector<1x1x8x32xf32> to vector<1x8x32xf32>
    %c5 = arith.constant 5 : index
    %c0_105 = arith.constant 0 : index
    %c0_106 = arith.constant 0 : index
    %201 = vector.load %arg3[%c5, %c0_105, %c0_106] : memref<6x32x64xbf16, #tpu.memory_space<vmem>>, vector<1x32x64xbf16>
    %202 = vector.shape_cast %201 : vector<1x32x64xbf16> to vector<32x64xbf16>
    %203 = vector.shape_cast %200 : vector<1x8x32xf32> to vector<8x32xf32>
    %204 = arith.truncf %203 : vector<8x32xf32> to vector<8x32xbf16>
    %205 = vector.extract_strided_slice %202 {offsets = [0, 0], sizes = [32, 32], strides = [1, 1]} : vector<32x64xbf16> to vector<32x32xbf16>
    %cst_107 = arith.constant dense<0.000000e+00> : vector<8x32xf32>
    %206 = tpu.matmul %204, %205, %cst_107 {dimension_numbers = #tpu.dot_dimension_numbers<[1], [0], [0], [1], [0, 0, 1, 1], [], []>} : vector<8x32xbf16>, vector<32x32xbf16>, vector<8x32xf32> -> vector<8x32xf32>
    %207 = vector.shape_cast %206 : vector<8x32xf32> to vector<1x8x32xf32>
    %208 = vector.shape_cast %116 : vector<1x16x32xf32> to vector<16x32xf32>
    %209 = arith.truncf %208 : vector<16x32xf32> to vector<16x32xbf16>
    %210 = vector.extract_strided_slice %202 {offsets = [0, 32], sizes = [32, 32], strides = [1, 1]} : vector<32x64xbf16> to vector<32x32xbf16>
    %cst_108 = arith.constant dense<0.000000e+00> : vector<16x32xf32>
    %211 = tpu.matmul %209, %210, %cst_108 {dimension_numbers = #tpu.dot_dimension_numbers<[1], [0], [0], [1], [0, 0, 1, 1], [], []>} : vector<16x32xbf16>, vector<32x32xbf16>, vector<16x32xf32> -> vector<16x32xf32>
    %212 = vector.shape_cast %211 : vector<16x32xf32> to vector<1x16x32xf32>
    %c5_109 = arith.constant 5 : index
    %c0_110 = arith.constant 0 : index
    %c0_111 = arith.constant 0 : index
    %213 = vector.load %arg4[%c5_109, %c0_110, %c0_111] : memref<6x32x32xbf16, #tpu.memory_space<vmem>>, vector<1x32x32xbf16>
    %214 = vector.shape_cast %213 : vector<1x32x32xbf16> to vector<32x32xbf16>
    %215 = arith.truncf %207 : vector<1x8x32xf32> to vector<1x8x32xbf16>
    %216 = arith.truncf %116 : vector<1x16x32xf32> to vector<1x16x32xbf16>
    "tpu.trace_start"() <{level = 10 : i32, message = "bqd,bkd->bqk"}> : () -> ()
    %cst_112 = arith.constant dense<0.000000e+00> : vector<1x8x16xf32>
    %217 = tpu.matmul %215, %216, %cst_112 {dimension_numbers = #tpu.dot_dimension_numbers<[2], [2], [1], [1], [0, 0, 0, 1, 1, 1], [0], [0]>} : vector<1x8x32xbf16>, vector<1x16x32xbf16>, vector<1x8x16xf32> -> vector<1x8x16xf32>
    "tpu.trace_stop"() : () -> ()
    %cst_113 = arith.constant dense<0xFF800000> : vector<1x8xf32>
    %218 = vector.multi_reduction <maximumf>, %217, %cst_113 [2] : vector<1x8x16xf32> to vector<1x8xf32>
    %219 = vector.shape_cast %218 : vector<1x8xf32> to vector<1x8x1xf32>
    %220 = vector.broadcast %219 : vector<1x8x1xf32> to vector<1x8x16xf32>
    %221 = arith.subf %217, %220 : vector<1x8x16xf32>
    %222 = math.exp %221 : vector<1x8x16xf32>
    %cst_114 = arith.constant dense<0.000000e+00> : vector<1x8xf32>
    %223 = vector.multi_reduction <add>, %222, %cst_114 [2] : vector<1x8x16xf32> to vector<1x8xf32>
    %224 = vector.shape_cast %223 : vector<1x8xf32> to vector<1x8x1xf32>
    %cst_115 = arith.constant 1.000000e+00 : f32
    %225 = vector.broadcast %cst_115 : f32 to vector<1x8x1xf32>
    %226 = arith.divf %225, %224 : vector<1x8x1xf32>
    %227 = vector.broadcast %226 : vector<1x8x1xf32> to vector<1x8x16xf32>
    %228 = arith.mulf %222, %227 : vector<1x8x16xf32>
    %229 = arith.truncf %228 : vector<1x8x16xf32> to vector<1x8x16xbf16>
    %230 = arith.truncf %212 : vector<1x16x32xf32> to vector<1x16x32xbf16>
    "tpu.trace_start"() <{level = 10 : i32, message = "bqk,bkd->bqd"}> : () -> ()
    %cst_116 = arith.constant dense<0.000000e+00> : vector<1x8x32xf32>
    %231 = tpu.matmul %229, %230, %cst_116 {dimension_numbers = #tpu.dot_dimension_numbers<[2], [1], [1], [2], [0, 0, 0, 1, 1, 2], [0], [0]>} : vector<1x8x16xbf16>, vector<1x16x32xbf16>, vector<1x8x32xf32> -> vector<1x8x32xf32>
    "tpu.trace_stop"() : () -> ()
    %232 = vector.shape_cast %231 : vector<1x8x32xf32> to vector<8x32xf32>
    %233 = arith.truncf %232 : vector<8x32xf32> to vector<8x32xbf16>
    %cst_117 = arith.constant dense<0.000000e+00> : vector<8x32xf32>
    %234 = tpu.matmul %233, %214, %cst_117 {dimension_numbers = #tpu.dot_dimension_numbers<[1], [0], [0], [1], [0, 0, 1, 1], [], []>} : vector<8x32xbf16>, vector<32x32xbf16>, vector<8x32xf32> -> vector<8x32xf32>
    %235 = vector.shape_cast %234 : vector<8x32xf32> to vector<1x8x32xf32>
    %236 = arith.addf %235, %200 : vector<1x8x32xf32>
    %c2_118 = arith.constant 2 : index
    %c0_119 = arith.constant 0 : index
    %c0_120 = arith.constant 0 : index
    %c0_121 = arith.constant 0 : index
    %237 = vector.load %arg6[%c2_118, %c0_119, %c0_120, %c0_121] : memref<3x1x8x32xf32, #tpu.memory_space<vmem>>, vector<1x1x8x32xf32>
    %238 = vector.shape_cast %237 : vector<1x1x8x32xf32> to vector<1x8x32xf32>
    %239 = vector.shape_cast %236 : vector<1x8x32xf32> to vector<1x1x8x32xf32>
    tpu.vector_store %arg6[%c2_118, %c0_119, %c0_120, %c0_121], %239 {strides = array<i32>} : memref<3x1x8x32xf32, #tpu.memory_space<vmem>>, vector<1x1x8x32xf32>,
    return
  }
  func.func @transform_0(%arg0: i32) -> (i32, i32, i32, i32) {
    %c0_i32 = arith.constant 0 : i32
    %c0_i32_0 = arith.constant 0 : i32
    %c0_i32_1 = arith.constant 0 : i32
    %c0_i32_2 = arith.constant 0 : i32
    return %c0_i32, %arg0, %c0_i32_0, %c0_i32_1 : i32, i32, i32, i32
  }
  func.func @transform_1(%arg0: i32) -> (i32, i32, i32, i32) {
    %c0_i32 = arith.constant 0 : i32
    %c0_i32_0 = arith.constant 0 : i32
    %c0_i32_1 = arith.constant 0 : i32
    %c0_i32_2 = arith.constant 0 : i32
    return %c0_i32, %arg0, %c0_i32_0, %c0_i32_1 : i32, i32, i32, i32
  }
  func.func @transform_2(%arg0: i32) -> (i32, i32, i32) {
    %c0_i32 = arith.constant 0 : i32
    %c0_i32_0 = arith.constant 0 : i32
    %c0_i32_1 = arith.constant 0 : i32
    %c0_i32_2 = arith.constant 0 : i32
    return %c0_i32, %c0_i32_0, %c0_i32_1 : i32, i32, i32
  }
  func.func @transform_3(%arg0: i32) -> (i32, i32, i32) {
    %c0_i32 = arith.constant 0 : i32
    %c0_i32_0 = arith.constant 0 : i32
    %c0_i32_1 = arith.constant 0 : i32
    %c0_i32_2 = arith.constant 0 : i32
    return %c0_i32, %c0_i32_0, %c0_i32_1 : i32, i32, i32
  }
  func.func @transform_4(%arg0: i32) -> (i32, i32, i32, i32) {
    %c0_i32 = arith.constant 0 : i32
    %c0_i32_0 = arith.constant 0 : i32
    %c0_i32_1 = arith.constant 0 : i32
    %c0_i32_2 = arith.constant 0 : i32
    return %c0_i32, %arg0, %c0_i32_0, %c0_i32_1 : i32, i32, i32, i32
  }
  func.func @transform_5(%arg0: i32) -> (i32, i32, i32, i32) {
    %c0_i32 = arith.constant 0 : i32
    %c0_i32_0 = arith.constant 0 : i32
    %c0_i32_1 = arith.constant 0 : i32
    %c0_i32_2 = arith.constant 0 : i32
    return %c0_i32, %arg0, %c0_i32_0, %c0_i32_1 : i32, i32, i32, i32
  }
}

</mosaic_0001>

<bundles_post_ra>
// kernel: collaborative_block_forward.1
= control target key start
LH: loop header
LB: loop body
LE: loop exit
PB: predicated region body
PF: predicated region fallthrough
CT: control target
= control target key end

     0   :  { %s2575_s18 = smov 0   ;;  %s2577_s19 = smov 0   ;;  %s2957_s0 = inlined_call_operand.vmem [shape: f32[3,2,8,32], index: 0, kind: input, shape index: {}]   ;;  %s2958_s1 = inlined_call_operand.vmem [shape: f32[3,2,8,32], index: 1, kind: input, shape index: {}]   ;;  %s2959_s2 = inlined_call_operand.vmem [shape: bf16[6,32,64], index: 2, kind: input, shape index: {}]   ;;  %s2960_s3 = inlined_call_operand.vmem [shape: bf16[6,32,32], index: 3, kind: input, shape index: {}]   ;;  %s2961_s4 = inlined_call_operand.vmem [shape: f32[3,2,8,32], index: 4, kind: output, shape index: {0}]   ;;  %s2962_s5 = inlined_call_operand.vmem [shape: f32[3,2,8,32], index: 5, kind: output, shape index: {1}]  }
   0x1   :  { %s2579_s20 = smov 0  }
   0x2 LB: > { %s2591_s21 = sadd.s32 4294967295, %s2540_s20   ;;  %s2594_s22 = sadd.s32 1, %s2540_s20   ;;  %s2540_s20 = sphi %s2579_s20, %s2967_s20   ;;  %s2536_s19 = sphi %s2577_s19, %s2966_s19   ;;  %s2532_s18 = sphi %s2575_s18, %s2965_s18  }
   0x3   : > { %s20_s23 = ssub.s32 %s2540_s20, %s2594_s22  ;;  %s23_s24 = sadd.s32 1, %s2536_s19 }
   0x4   : > { %p21_p0 = scmp.eq.s32.totalorder %s20_s23, 0  ;;  %p30_p1 = scmp.ne.s32.totalorder %s2536_s19, %s2532_s18 }
   0x5   : > { %p31_p2 = scmp.eq.s32.totalorder %s2540_s20, 0  ;;  %p128_p3 = scmp.eq.s32.totalorder %s2591_s21, 1 }
   0x6   : > { %s2604_s25 = scalar_select %p21_p0, %s2536_s19, %s23_s24  }
   0x7   : > { %p2606_p4 = por %p31_p2, %p30_p1  ;;  %p2610_p5 = por %p128_p3, %p30_p1 }
   0x8   : > { %p2072_p6 = scmp.ge.s32.totalorder %s2540_s20, 2 }
   0xa   : > { %182 = sbr.rel (%p2072_p6) target bundleno = 27 (0x1b), region = 24 }
   0xf   : > { %185 = sbr.rel (!%p2606_p4) target bundleno = 21 (0x15), region = 28  ;;  %s187_s28 = sand.u32 (%p2606_p4), 1, %s2536_s19  }
  0x10   : > { %s2073_s29 = sshll.u32 (%p2606_p4), %s2540_s20, 3  ;;  %s2440_s30 = smul.u32 (%p2606_p4), 24, %s187_s28 }
  0x11   : > { %s191_s8 = scalar_lea.vmem (%p2606_p4), %s2957_s0, %s2073_s29 }
  0x12   : > { %v224_v0 = vld [vmem:[%s191_s8] sm:$0xff] (%p2606_p4)  ;;  %v226_v1 = vld [vmem:[%s191_s8 + $0x10] sm:$0xff] (%p2606_p4)  ;;  %s189_s9 = scalar_lea.vmem (%p2606_p4), [#allocation2], %s2440_s30 }
  0x13   : > { %v228_v2 = vld [vmem:[%s191_s8 + $0x20] sm:$0xff] (%p2606_p4)  ;;  %225 = vst [vmem:[%s189_s9] sm:$0xff] (%p2606_p4), %v224_v0  ;;  %227 = vst [vmem:[%s189_s9 + $0x8] sm:$0xff] (%p2606_p4), %v226_v1 }
  0x14   : > { %229 = vst [vmem:[%s189_s9 + $0x10] sm:$0xff] %v228_v2 }
  0x15 PF: > { %235 = sbr.rel (!%p2606_p4) target bundleno = 27 (0x1b), region = 66  ;;  %s237_s10 = sand.u32 (%p2606_p4), 1, %s2536_s19  }
  0x16   : > { %s2074_s11 = sshll.u32 (%p2606_p4), %s2540_s20, 3  ;;  %s2441_s12 = smul.u32 (%p2606_p4), 24, %s237_s10 }
  0x17   : > { %s241_s15 = scalar_lea.vmem (%p2606_p4), %s2958_s1, %s2074_s11 }
  0x18   : > { %v274_v3 = vld [vmem:[%s241_s15] sm:$0xff] (%p2606_p4)  ;;  %v276_v4 = vld [vmem:[%s241_s15 + $0x10] sm:$0xff] (%p2606_p4)  ;;  %s239_s16 = scalar_lea.vmem (%p2606_p4), [#allocation3], %s2441_s12 }
  0x19   : > { %v278_v5 = vld [vmem:[%s241_s15 + $0x20] sm:$0xff] (%p2606_p4)  ;;  %275 = vst [vmem:[%s239_s16] sm:$0xff] (%p2606_p4), %v274_v3  ;;  %277 = vst [vmem:[%s239_s16 + $0x8] sm:$0xff] (%p2606_p4), %v276_v4 }
  0x1a   : > { %279 = vst [vmem:[%s239_s16 + $0x10] sm:$0xff] %v278_v5 }
  0x1b PF: > { %p2075_p7 = scmp.ge.s32.totalorder %s2540_s20, 1  ;;  %p284_p8 = scmp.lt.s32.totalorder %s2540_s20, 3 }
  0x1d   : > { %p285_p9 = pnand %p2075_p7, %p284_p8 }
  0x1e   : > { %s291_s20 = sand.u32 (!%p285_p9), 1, %s2532_s18   ;;  %s2544_s18 = smov (!%p285_p9), 96  }
  0x1f   : > { %288 = sbr.rel (%p285_p9) target bundleno = 4893 (0x131d), region = 104 }
  0x20   : > { %s2643_s28 = smul.u32 (!%p285_p9), 24, %s291_s20 }
  0x22   : > { %s2648_s29 = scalar_lea.vmem (!%p285_p9), [#allocation2], %s2643_s28  ;;  %s2708_s13 = scalar_lea.vmem (!%p285_p9), [#allocation4], %s2643_s28 }
  0x23   : > { %s2784_s12 = scalar_lea.vmem (!%p285_p9), [#allocation3], %s2643_s28 }
  0x24   : > { %v2470_v6 = vld [vmem:[%s2959_s2 + $0x8] sm:$0xff]   ;;  %v2542_v7 = vmov 0.0   ;;  %v2471_v8 = vld [vmem:[%s2959_s2] sm:$0xff]   ;;  %vm2543_vm0 = vmmov 0   ;;  %vm351_vm1 = vcmask 261120   ;;  %vm463_vm2 = vcmask 1043456  }
  0x25   : > { %2248 = vmatprep.subr.bf16.mxu0 %v2542_v7  ;;  %2256 = vmatprep.subr.bf16.mxu1 %v2542_v7  ;;  %v2651_v9 = vld [vmem:[%s2648_s29] sm:$0xff]  ;;  %vm443_vm3 = vcmask 64512   ;;  %v2474_v29 = vld [vmem:[%s2960_s3 + $0x8] sm:$0xff]   ;;  %v2473_v35 = vld [vmem:[%s2959_s2 + $0x10] sm:$0xff]   ;;  %vm1193_vm4 = vcmask 130048   ;;  %s2175_s16 = sshll.u32 (%p2610_p5), %s2591_s21, 3 }
  0x26   : > { %2249 = vmatpush3.bf16.msra.mxu0 %v2470_v6  ;;  %2252 = vmatprep.mubr.msk.bf16.mxu0 %vm2543_vm0, %v2542_v7  ;;  %v334_v10 = vpack.c.bf16 %v2651_v9, %v2651_v9  ;;  %v2472_v33 = vld [vmem:[%s2959_s2 + $0x18] sm:$0xff]   ;;  %v2683_v36 = vld [vmem:[%s2648_s29 + $0x8] sm:$0xff]  ;;  %s1879_s24 = scalar_lea.vmem (%p2610_p5), %s2961_s4, %s2175_s16 }
  0x27   : > { %2250 = vmatprep.subr.bf16.mxu0 %v2542_v7  ;;  %2258 = vmatprep.mubr.msk.bf16.mxu1 %vm2543_vm0, %v2542_v7  ;;  %v567_v37 = vpack.c.bf16 %v2683_v36, %v2683_v36  ;;  %v2475_v38 = vld [vmem:[%s2960_s3] sm:$0xff]   ;;  %v2478_v1 = vld [vmem:[%s2960_s3 + $0x18] sm:$0xff]  }
  0x28   : > { %v353_v11 = vsel %vm351_vm1, %v334_v10, 0 }
  0x29   : > { %2257 = vmatpush3.bf16.xpose.msra.mxu1 %v353_v11  ;;  %v586_v41 = vsel %vm351_vm1, %v567_v37, 0  ;;  %v2732_v11 = vld [vmem:[%s2648_s29 + $0x10] sm:$0xff]  ;;  %s2861_s29 = scalar_lea.vmem [#allocation5], %s2643_s28 }
  0x2a   : > { %2251 = vmatpush3.bf16.msra.mxu0 %v2471_v8  ;;  %2268 = vmatprep.subr.bf16.mxu1 %v2542_v7  ;;  %v2476_v8 = vld [vmem:[%s2959_s2 + $0x28] sm:$0xff]  }
  0x2b   : > { %2262 = vmatprep.subr.bf16.mxu0 %v2542_v7 }
  0x2d   : > { %2253 = vmatmul.mubr.msk.bf16.vlgmr.msra.gmra.mxu0 %vm351_vm1, %v334_v10  ;;  %v2477_v10 = vld [vmem:[%s2959_s2 + $0x20] sm:$0xff]  }
  0x2e   : > { %2264 = vmatprep.mubr.msk.bf16.mxu0 %vm2543_vm0, %v2542_v7 }
  0xed   : > { %v389_v12 = vpop.f32.mrf.mxu0 }
  0xee   : > { %v399_v13 = vpack.c.bf16 %v389_v12, %v389_v12  ;;  %v800_v12 = vpack.c.bf16 %v2732_v11, %v2732_v11 }
  0xef   : > { %v2254_v14 = vpop.f32.mrf.mxu0 }
  0xf0   : > { %458 = vrot.lane.b32.xlu1 %v399_v13, %s2544_s18  ;;  %2259 = vmatmul.mubr.msk.bf16.vlgmr.msra.gmra.mxu1 %vm351_vm1, %v399_v13  ;;  %v2479_v13 = vld [vmem:[%s2960_s3 + $0x10] sm:$0xff]  }
  0xf1   : > { %v392_v15 = vpop.f32.mrf.mxu0  ;;  %2272 = vmatprep.mubr.msk.bf16.mxu1 %vm2543_vm0, %v2542_v7  ;;  %2269 = vmatpush3.bf16.msra.mxu1 %v2474_v29 }
  0xf2   : > { %2270 = vmatprep.subr.bf16.mxu1 %v2542_v7 }
  0xf3   : > { %v2255_v16 = vpop.f32.mrf.mxu0 }
  0xf4   : > { %v819_v16 = vsel %vm351_vm1, %v800_v12, 0 }
  0xf5   : > { %2271 = vmatpush3.bf16.msra.mxu1 %v2475_v38 }
  0xf6   : > { %2284 = vmatprep.subr.bf16.mxu1 %v2542_v7 }
 0x162   : > { %v459_v17 = vpop.permute.xlu1 %458 }
 0x163   : > { %v465_v18 = vsel %vm463_vm2, %v459_v17, 0 }
 0x164   : > { %2263 = vmatpush3.bf16.msra.mxu0 %v465_v18 }
 0x165   : > { %2276 = vmatprep.subr.bf16.mxu0 %v2542_v7 }
 0x1b0   : > { %v437_v19 = vpop.f32.mrf.mxu1 }
 0x1b1   : > { %v444_v20 = vsel %vm443_vm3, %v437_v19, -inf }
 0x1b2   : > { %445 = vmax.xlane.f32.xlu0 %v444_v20  ;;  %v2260_v21 = vpop.f32.mrf.mxu1 }
 0x1b4   : > { %v440_v22 = vpop.f32.mrf.mxu1 }
 0x1b6   : > { %v2261_v23 = vpop.f32.mrf.mxu1 }
 0x23b   : > { %v446_v24 = vpop.xlane.xlu0 %445 }
 0x23c   : > { %v447_v25 = vsub.f32 %v437_v19, %v446_v24 }
 0x23e   : > { %v448_v26 = vmul.f32 1.442695, %v447_v25 }
 0x240   : > { %2494 = vpow2.f32 %v448_v26 }
 0x24d   : > { %v2495_v27 = vpop.eup %2494 }
 0x24e   : > { %v450_v28 = vsel %vm443_vm3, %v2495_v27, 0.0 }
 0x24f   : > { %451 = vadd.xlane.f32.xlu0 %v450_v28 }
 0x2d8   : > { %v452_v30 = vpop.xlane.xlu0 %451 }
 0x2d9   : > { %2496 = vrcp.f32 %v452_v30 }
 0x2e6   : > { %v2497_v31 = vpop.eup %2496 }
 0x2e7   : > { %v455_v32 = vmul.f32 %v2497_v31, %v2495_v27 }
 0x2e9   : > { %v456_v34 = vpack.c.bf16 %v455_v32, %v455_v32 }
 0x2eb   : > { %2265 = vmatmul.mubr.msk.bf16.vlgmr.msra.gmra.mxu0 %vm443_vm3, %v456_v34 }
 0x2ec   : > { %2277 = vmatpush3.bf16.msra.mxu0 %v2472_v33  ;;  %2280 = vmatprep.mubr.msk.bf16.mxu0 %vm2543_vm0, %v2542_v7 }
 0x2ed   : > { %2278 = vmatprep.subr.bf16.mxu0 %v2542_v7 }
 0x2f0   : > { %2279 = vmatpush3.bf16.msra.mxu0 %v2473_v35 }
 0x2f1   : > { %2290 = vmatprep.subr.bf16.mxu0 %v2542_v7 }
 0x2f3   : > { %2281 = vmatmul.mubr.msk.bf16.vlgmr.msra.gmra.mxu0 %vm351_vm1, %v567_v37 }
 0x2f4   : > { %2292 = vmatprep.mubr.msk.bf16.mxu0 %vm2543_vm0, %v2542_v7 }
 0x3ab   : > { %v501_v39 = vpop.f32.mrf.mxu0 }
 0x3ac   : > { %v507_v40 = vpack.c.bf16 %v501_v39, %v501_v39 }
 0x3ad   : > { %v2266_v42 = vpop.f32.mrf.mxu0 }
 0x3ae   : > { %2273 = vmatmul.mubr.msk.bf16.vlgmr.msra.gmra.mxu1 %vm351_vm1, %v507_v40  ;;  %v2480_v40 = vld [vmem:[%s2960_s3 + $0x28] sm:$0xff]  }
 0x3af   : > { %v504_v43 = vpop.f32.mrf.mxu0  ;;  %2285 = vmatpush3.bf16.xpose.msra.mxu1 %v586_v41  ;;  %2286 = vmatprep.mubr.msk.bf16.mxu1 %vm2543_vm0, %v2542_v7 }
 0x3b0   : > { %2296 = vmatprep.subr.bf16.mxu1 %v2542_v7 }
 0x3b1   : > { %v2267_v44 = vpop.f32.mrf.mxu0 }
 0x3b3   : > { %v622_v45 = vpop.f32.mrf.mxu0 }
 0x3b4   : > { %v633_v46 = vpack.c.bf16 %v622_v45, %v622_v45 }
 0x3b5   : > { %v2282_v47 = vpop.f32.mrf.mxu0 }
 0x3b6   : > { %2287 = vmatmul.mubr.msk.bf16.vlgmr.msra.gmra.mxu1 %vm351_vm1, %v633_v46  ;;  %v2481_v47 = vld [vmem:[%s2960_s3 + $0x20] sm:$0xff]  }
 0x3b7   : > { %v625_v48 = vpop.f32.mrf.mxu0  ;;  %2300 = vmatprep.mubr.msk.bf16.mxu1 %vm2543_vm0, %v2542_v7  ;;  %2297 = vmatpush3.bf16.msra.mxu1 %v2478_v1 }
 0x3b8   : > { %2298 = vmatprep.subr.bf16.mxu1 %v2542_v7  ;;  %v2482_v48 = vld [vmem:[%s2959_s2 + $0x38] sm:$0xff]  }
 0x3b9   : > { %v2283_v49 = vpop.f32.mrf.mxu0 }
 0x3ba   : > { %v2483_v49 = vld [vmem:[%s2959_s2 + $0x30] sm:$0xff]  }
 0x3bb   : > { %2299 = vmatpush3.bf16.msra.mxu1 %v2479_v13 }
 0x3bc   : > { %2312 = vmatprep.subr.bf16.mxu1 %v2542_v7 }
 0x46e   : > { %v557_v50 = vpop.f32.mrf.mxu1 }
 0x46f   : > { %v2705_v51 = vadd.f32 %v557_v50, %v2651_v9  ;;  %v2787_v50 = vld [vmem:[%s2784_s12] sm:$0xff] }
 0x470   : > { %v2274_v52 = vpop.f32.mrf.mxu1 }
 0x471   : > { %564 = vst.msk [vmem:[%s2708_s13] sm:$0xff] %vm351_vm1, %v2705_v51  ;;  %v1037_v52 = vpack.c.bf16 %v2787_v50, %v2787_v50 }
 0x472   : > { %v560_v53 = vpop.f32.mrf.mxu1 }
 0x474   : > { %v2275_v54 = vpop.f32.mrf.mxu1 }
 0x476   : > { %v671_v55 = vpop.f32.mrf.mxu1 }
 0x477   : > { %v677_v56 = vsel %vm443_vm3, %v671_v55, -inf }
 0x478   : > { %678 = vmax.xlane.f32.xlu1 %v677_v56  ;;  %v2288_v57 = vpop.f32.mrf.mxu1 }
 0x47a   : > { %v674_v58 = vpop.f32.mrf.mxu1 }
 0x47c   : > { %v2289_v59 = vpop.f32.mrf.mxu1 }
 0x501   : > { %v679_v60 = vpop.xlane.xlu1 %678 }
 0x502   : > { %v680_v61 = vsub.f32 %v671_v55, %v679_v60 }
 0x504   : > { %v681_v62 = vmul.f32 1.442695, %v680_v61 }
 0x506   : > { %2498 = vpow2.f32 %v681_v62 }
 0x513   : > { %v2499_v63 = vpop.eup %2498 }
 0x514   : > { %v683_v0 = vsel %vm443_vm3, %v2499_v63, 0.0 }
 0x515   : > { %684 = vadd.xlane.f32.xlu0 %v683_v0 }
 0x52b   : > { %691 = vrot.lane.b32.xlu0 %v633_v46, %s2544_s18 }
 0x59e   : > { %v685_v2 = vpop.xlane.xlu0 %684 }
 0x59f   : > { %2500 = vrcp.f32 %v685_v2 }
 0x5a2   : > { %v692_v3 = vpop.permute.xlu0 %691 }
 0x5a3   : > { %v697_v4 = vsel %vm463_vm2, %v692_v3, 0 }
 0x5a4   : > { %2291 = vmatpush3.bf16.msra.mxu0 %v697_v4 }
 0x5a5   : > { %2304 = vmatprep.subr.bf16.mxu0 %v2542_v7 }
 0x5ac   : > { %v2501_v5 = vpop.eup %2500 }
 0x5ad   : > { %v688_v6 = vmul.f32 %v2501_v5, %v2499_v63 }
 0x5af   : > { %v689_v9 = vpack.c.bf16 %v688_v6, %v688_v6 }
 0x5b1   : > { %2293 = vmatmul.mubr.msk.bf16.vlgmr.msra.gmra.mxu0 %vm443_vm3, %v689_v9 }
 0x5b2   : > { %2305 = vmatpush3.bf16.msra.mxu0 %v2476_v8  ;;  %2308 = vmatprep.mubr.msk.bf16.mxu0 %vm2543_vm0, %v2542_v7 }
 0x5b3   : > { %2306 = vmatprep.subr.bf16.mxu0 %v2542_v7 }
 0x5b6   : > { %2307 = vmatpush3.bf16.msra.mxu0 %v2477_v10 }
 0x5b7   : > { %2318 = vmatprep.subr.bf16.mxu0 %v2542_v7 }
 0x5b9   : > { %2309 = vmatmul.mubr.msk.bf16.vlgmr.msra.gmra.mxu0 %vm351_vm1, %v800_v12 }
 0x5ba   : > { %2320 = vmatprep.mubr.msk.bf16.mxu0 %vm2543_vm0, %v2542_v7 }
 0x671   : > { %v733_v14 = vpop.f32.mrf.mxu0 }
 0x672   : > { %v739_v15 = vpack.c.bf16 %v733_v14, %v733_v14 }
 0x673   : > { %v2294_v17 = vpop.f32.mrf.mxu0 }
 0x674   : > { %2301 = vmatmul.mubr.msk.bf16.vlgmr.msra.gmra.mxu1 %vm351_vm1, %v739_v15 }
 0x675   : > { %v736_v18 = vpop.f32.mrf.mxu0  ;;  %2313 = vmatpush3.bf16.xpose.msra.mxu1 %v819_v16  ;;  %2314 = vmatprep.mubr.msk.bf16.mxu1 %vm2543_vm0, %v2542_v7 }
 0x676   : > { %2324 = vmatprep.subr.bf16.mxu1 %v2542_v7 }
 0x677   : > { %v2295_v19 = vpop.f32.mrf.mxu0 }
 0x679   : > { %v855_v20 = vpop.f32.mrf.mxu0 }
 0x67a   : > { %v866_v21 = vpack.c.bf16 %v855_v20, %v855_v20 }
 0x67b   : > { %v2310_v22 = vpop.f32.mrf.mxu0 }
 0x67c   : > { %2315 = vmatmul.mubr.msk.bf16.vlgmr.msra.gmra.mxu1 %vm351_vm1, %v866_v21 }
 0x67d   : > { %v858_v23 = vpop.f32.mrf.mxu0  ;;  %2328 = vmatprep.mubr.msk.bf16.mxu1 %vm2543_vm0, %v2542_v7  ;;  %2325 = vmatpush3.bf16.msra.mxu1 %v2480_v40 }
 0x67e   : > { %2326 = vmatprep.subr.bf16.mxu1 %v2542_v7 }
 0x67f   : > { %v2311_v24 = vpop.f32.mrf.mxu0 }
 0x680   : > { %v2484_v24 = vld [vmem:[%s2959_s2 + $0x48] sm:$0xff]  }
 0x681   : > { %2327 = vmatpush3.bf16.msra.mxu1 %v2481_v47 }
 0x682   : > { %2340 = vmatprep.subr.bf16.mxu1 %v2542_v7 }
 0x734   : > { %v789_v25 = vpop.f32.mrf.mxu1 }
 0x735   : > { %v2754_v26 = vadd.f32 %v2683_v36, %v789_v25  ;;  %v2485_v25 = vld [vmem:[%s2959_s2 + $0x40] sm:$0xff]  }
 0x736   : > { %v2302_v27 = vpop.f32.mrf.mxu1 }
 0x737   : > { %2101 = vst.msk [vmem:[%s2708_s13 + $0x8] sm:$0xff] %vm351_vm1, %v2754_v26  ;;  %v2486_v27 = vld [vmem:[%s2960_s3 + $0x38] sm:$0xff]  }
 0x738   : > { %v792_v28 = vpop.f32.mrf.mxu1 }
 0x73a   : > { %v2303_v29 = vpop.f32.mrf.mxu1 }
 0x73c   : > { %v904_v30 = vpop.f32.mrf.mxu1 }
 0x73d   : > { %v910_v31 = vsel %vm443_vm3, %v904_v30, -inf }
 0x73e   : > { %911 = vmax.xlane.f32.xlu0 %v910_v31  ;;  %v2316_v32 = vpop.f32.mrf.mxu1 }
 0x73f   : > { %v2832_v32 = vld [vmem:[%s2784_s12 + $0x8] sm:$0xff] }
 0x740   : > { %v907_v33 = vpop.f32.mrf.mxu1 }
 0x742   : > { %v2317_v34 = vpop.f32.mrf.mxu1 }
 0x743   : > { %v1316_v34 = vpack.c.bf16 %v2832_v32, %v2832_v32 }
 0x754   : > { %1094 = vrot.lane.b32.xlu0 %v2483_v49, %s2544_s18 }
 0x7c7   : > { %v912_v35 = vpop.xlane.xlu0 %911 }
 0x7c8   : > { %v913_v37 = vsub.f32 %v904_v30, %v912_v35 }
 0x7ca   : > { %v914_v38 = vmul.f32 1.442695, %v913_v37  ;;  %v2487_v37 = vld [vmem:[%s2960_s3 + $0x30] sm:$0xff]  }
 0x7cb   : > { %v1095_v59 = vpop.permute.xlu0 %1094 }
 0x7cc   : > { %2502 = vpow2.f32 %v914_v38 }
 0x7d9   : > { %v2503_v39 = vpop.eup %2502 }
 0x7da   : > { %v916_v36 = vsel %vm443_vm3, %v2503_v39, 0.0 }
 0x7db   : > { %917 = vadd.xlane.f32.xlu1 %v916_v36 }
 0x7ec   : > { %924 = vrot.lane.b32.xlu1 %v866_v21, %s2544_s18 }
 0x7f0   : > { %1096 = vrot.lane.b32.xlu1 %v2482_v48, %s2544_s18 }
 0x864   : > { %v918_v41 = vpop.xlane.xlu1 %917 }
 0x865   : > { %2504 = vrcp.f32 %v918_v41 }
 0x868   : > { %v925_v42 = vpop.permute.xlu1 %924 }
 0x869   : > { %v930_v43 = vsel %vm463_vm2, %v925_v42, 0 }
 0x86a   : > { %2319 = vmatpush3.bf16.msra.mxu0 %v930_v43 }
 0x86b   : > { %2332 = vmatprep.subr.bf16.mxu0 %v2542_v7 }
 0x86c   : > { %v1097_v55 = vpop.permute.xlu1 %1096 }
 0x872   : > { %v2505_v44 = vpop.eup %2504 }
 0x873   : > { %v921_v45 = vmul.f32 %v2505_v44, %v2503_v39 }
 0x875   : > { %v922_v46 = vpack.c.bf16 %v921_v45, %v921_v45 }
 0x877   : > { %2321 = vmatmul.mubr.msk.bf16.vlgmr.msra.gmra.mxu0 %vm443_vm3, %v922_v46 }
 0x878   : > { %2336 = vmatprep.mubr.msk.bf16.mxu0 %vm2543_vm0, %v2542_v7  ;;  %2333 = vmatpush3.bf16.msra.mxu0 %v2482_v48 }
 0x879   : > { %2334 = vmatprep.subr.bf16.mxu0 %v2542_v7 }
 0x87c   : > { %2335 = vmatpush3.bf16.msra.mxu0 %v2483_v49 }
 0x87d   : > { %2348 = vmatprep.subr.bf16.mxu0 %v2542_v7 }
 0x87f   : > { %2337 = vmatmul.mubr.msk.bf16.vlgmr.msra.gmra.mxu0 %vm351_vm1, %v1037_v52 }
 0x880   : > { %2350 = vmatprep.mubr.msk.bf16.mxu0 %vm2543_vm0, %v2542_v7 }
 0x937   : > { %v966_v53 = vpop.f32.mrf.mxu0 }
 0x938   : > { %v972_v54 = vpack.c.bf16 %v966_v53, %v966_v53 }
 0x939   : > { %v2322_v56 = vpop.f32.mrf.mxu0 }
 0x93a   : > { %2329 = vmatmul.mubr.msk.bf16.vlgmr.msra.gmra.mxu1 %vm351_vm1, %v972_v54 }
 0x93b   : > { %v969_v57 = vpop.f32.mrf.mxu0  ;;  %2341 = vmatpush3.bf16.msra.mxu1 %v1097_v55  ;;  %2344 = vmatprep.mubr.msk.bf16.mxu1 %vm2543_vm0, %v2542_v7 }
 0x93c   : > { %2342 = vmatprep.subr.bf16.mxu1 %v2542_v7 }
 0x93d   : > { %v2323_v58 = vpop.f32.mrf.mxu0 }
 0x93f   : > { %2343 = vmatpush3.bf16.msra.mxu1 %v1095_v59  ;;  %v1087_v60 = vpop.f32.mrf.mxu0 }
 0x940   : > { %2354 = vmatprep.subr.bf16.mxu1 %v2542_v7  ;;  %v1149_v8 = vpack.c.bf16 %v1087_v60, %v1087_v60 }
 0x941   : > { %v2338_v61 = vpop.f32.mrf.mxu0 }
 0x943   : > { %v1090_v62 = vpop.f32.mrf.mxu0 }
 0x945   : > { %v2339_v63 = vpop.f32.mrf.mxu0 }
 0x9fa   : > { %v1022_v0 = vpop.f32.mrf.mxu1 }
 0x9fb   : > { %v1028_v1 = vadd.f32 %v2732_v11, %v1022_v0 }
 0x9fc   : > { %v2330_v2 = vpop.f32.mrf.mxu1 }
 0x9fd   : > { %2119 = vst.msk [vmem:[%s2708_s13 + $0x10] sm:$0xff] %vm351_vm1, %v1028_v1  ;;  %v1093_v3 = vpack.c.bf16 %v1028_v1, %v2754_v26  ;;  %v1372_v33 = vpack.c.bf16 %v1028_v1, %v2705_v51 }
 0x9fe   : > { %v1025_v4 = vpop.f32.mrf.mxu1 }
 0x9ff   : > { %2345 = vmatmul.mubr.msk.bf16.vlgmr.msra.gmra.mxu1 %vm351_vm1, %v1093_v3  ;;  %v1101_v5 = vsel %vm351_vm1, %v1093_v3, 0  ;;  %v1380_v35 = vsel %vm351_vm1, %v1372_v33, 0 }
 0xa00   : > { %v2331_v6 = vpop.f32.mrf.mxu1  ;;  %2349 = vmatpush3.bf16.xpose.msra.mxu0 %v1101_v5  ;;  %2356 = vmatprep.mubr.msk.bf16.mxu1 %vm2543_vm0, %v2542_v7 }
 0xa01   : > { %2360 = vmatprep.subr.bf16.mxu0 %v2542_v7  ;;  %v2488_v6 = vld [vmem:[%s2959_s2 + $0x58] sm:$0xff]  }
 0xa07   : > { %2351 = vmatmul.mubr.msk.bf16.vlgmr.msra.gmra.mxu0 %vm351_vm1, %v1149_v8  ;;  %v2489_v8 = vld [vmem:[%s2959_s2 + $0x50] sm:$0xff]  }
 0xa08   : > { %2364 = vmatprep.mubr.msk.bf16.mxu0 %vm2543_vm0, %v2542_v7  ;;  %2361 = vmatpush3.bf16.msra.mxu0 %v2486_v27 }
 0xa09   : > { %2362 = vmatprep.subr.bf16.mxu0 %v2542_v7 }
 0xa0c   : > { %2363 = vmatpush3.bf16.msra.mxu0 %v2487_v37 }
 0xa0d   : > { %2376 = vmatprep.subr.bf16.mxu0 %v2542_v7 }
 0xabf   : > { %v1137_v9 = vpop.f32.mrf.mxu1 }
 0xac1   : > { %v2346_v10 = vpop.f32.mrf.mxu1 }
 0xac3   : > { %v1140_v11 = vpop.f32.mrf.mxu1 }
 0xac4   : > { %v1207_v12 = vpack.c.bf16 %v1140_v11, %v1137_v9  ;;  %v2490_v9 = vld [vmem:[%s2960_s3 + $0x48] sm:$0xff]  }
 0xac5   : > { %v2347_v13 = vpop.f32.mrf.mxu1 }
 0xac6   : > { %2355 = vmatpush3.bf16.msra.mxu1 %v1207_v12 }
 0xac7   : > { %v1187_v14 = vpop.f32.mrf.mxu0  ;;  %2368 = vmatprep.subr.bf16.mxu1 %v2542_v7 }
 0xac8   : > { %v1194_v15 = vsel %vm1193_vm4, %v1187_v14, -inf }
 0xac9   : > { %1195 = vmax.xlane.f32.xlu1 %v1194_v15  ;;  %v2352_v16 = vpop.f32.mrf.mxu0  ;;  %v1651_v15 = vpack.c.bf16 %v2754_v26, %v2705_v51  ;;  %v2491_v51 = vld [vmem:[%s2960_s3 + $0x40] sm:$0xff]  }
 0xacb   : > { %v1190_v17 = vpop.f32.mrf.mxu0 }
 0xacc   : > { %v1659_v17 = vsel %vm351_vm1, %v1651_v15, 0 }
 0xacd   : > { %v2353_v18 = vpop.f32.mrf.mxu0 }
 0xada   : > { %1375 = vrot.lane.b32.xlu1 %v2484_v24, %s2544_s18 }
 0xb52   : > { %v1196_v19 = vpop.xlane.xlu1 %1195 }
 0xb53   : > { %v1197_v20 = vsub.f32 %v1187_v14, %v1196_v19  ;;  %v2884_v14 = vld [vmem:[%s2784_s12 + $0x10] sm:$0xff] }
 0xb54   : > { %v1595_v16 = vpack.c.bf16 %v2884_v14, %v2884_v14 }
 0xb55   : > { %v1198_v21 = vmul.f32 1.442695, %v1197_v20 }
 0xb56   : > { %v1376_v36 = vpop.permute.xlu1 %1375 }
 0xb57   : > { %2506 = vpow2.f32 %v1198_v21 }
 0xb64   : > { %v2507_v22 = vpop.eup %2506 }
 0xb65   : > { %v1200_v23 = vsel %vm1193_vm4, %v2507_v22, 0.0 }
 0xb66   : > { %1201 = vadd.xlane.f32.xlu0 %v1200_v23 }
 0xb7c   : > { %1373 = vrot.lane.b32.xlu0 %v2485_v25, %s2544_s18 }
 0xbef   : > { %v1202_v28 = vpop.xlane.xlu0 %1201 }
 0xbf0   : > { %2508 = vrcp.f32 %v1202_v28 }
 0xbf3   : > { %v1374_v42 = vpop.permute.xlu0 %1373 }
 0xbfd   : > { %v2509_v29 = vpop.eup %2508 }
 0xbfe   : > { %v1205_v30 = vmul.f32 %v2509_v29, %v2507_v22 }
 0xc00   : > { %v1206_v31 = vpack.c.bf16 %v1205_v30, %v1205_v30 }
 0xc02   : > { %2357 = vmatmul.mubr.msk.bf16.vlgmr.msra.gmra.mxu1 %vm1193_vm4, %v1206_v31 }
 0xc03   : > { %2369 = vmatpush3.bf16.msra.mxu1 %v2484_v24  ;;  %2372 = vmatprep.mubr.msk.bf16.mxu1 %vm2543_vm0, %v2542_v7 }
 0xc04   : > { %2370 = vmatprep.subr.bf16.mxu1 %v2542_v7 }
 0xc07   : > { %2371 = vmatpush3.bf16.msra.mxu1 %v2485_v25 }
 0xc08   : > { %2384 = vmatprep.subr.bf16.mxu1 %v2542_v7 }
 0xc0a   : > { %2373 = vmatmul.mubr.msk.bf16.vlgmr.msra.gmra.mxu1 %vm351_vm1, %v1316_v34 }
 0xc0b   : > { %2385 = vmatpush3.bf16.xpose.msra.mxu1 %v1380_v35  ;;  %2386 = vmatprep.mubr.msk.bf16.mxu1 %vm2543_vm0, %v2542_v7 }
 0xc0c   : > { %2396 = vmatprep.subr.bf16.mxu1 %v2542_v7 }
 0xcc2   : > { %v1245_v38 = vpop.f32.mrf.mxu1 }
 0xcc3   : > { %v1251_v39 = vpack.c.bf16 %v1245_v38, %v1245_v38 }
 0xcc4   : > { %v2358_v40 = vpop.f32.mrf.mxu1 }
 0xcc5   : > { %2365 = vmatmul.mubr.msk.bf16.vlgmr.msra.gmra.mxu0 %vm351_vm1, %v1251_v39 }
 0xcc6   : > { %v1248_v41 = vpop.f32.mrf.mxu1  ;;  %2377 = vmatpush3.bf16.msra.mxu0 %v1376_v36  ;;  %2380 = vmatprep.mubr.msk.bf16.mxu0 %vm2543_vm0, %v2542_v7 }
 0xcc7   : > { %2378 = vmatprep.subr.bf16.mxu0 %v2542_v7 }
 0xcc8   : > { %v2359_v43 = vpop.f32.mrf.mxu1 }
 0xcca   : > { %v1366_v44 = vpop.f32.mrf.mxu1  ;;  %2379 = vmatpush3.bf16.msra.mxu0 %v1374_v42 }
 0xccb   : > { %v1428_v45 = vpack.c.bf16 %v1366_v44, %v1366_v44  ;;  %2390 = vmatprep.subr.bf16.mxu0 %v2542_v7 }
 0xccc   : > { %v2374_v46 = vpop.f32.mrf.mxu1 }
 0xccd   : > { %2381 = vmatmul.mubr.msk.bf16.vlgmr.msra.gmra.mxu0 %vm351_vm1, %v1372_v33  ;;  %2387 = vmatmul.mubr.msk.bf16.vlgmr.msra.gmra.mxu1 %vm351_vm1, %v1428_v45 }
 0xcce   : > { %v1369_v47 = vpop.f32.mrf.mxu1  ;;  %2392 = vmatprep.mubr.msk.bf16.mxu0 %vm2543_vm0, %v2542_v7  ;;  %2400 = vmatprep.mubr.msk.bf16.mxu1 %vm2543_vm0, %v2542_v7 }
 0xccf   : > { %2397 = vmatpush3.bf16.msra.mxu1 %v2490_v9 }
 0xcd0   : > { %v2375_v48 = vpop.f32.mrf.mxu1  ;;  %2398 = vmatprep.subr.bf16.mxu1 %v2542_v7 }
 0xcd3   : > { %2399 = vmatpush3.bf16.msra.mxu1 %v2491_v51 }
 0xcd4   : > { %2412 = vmatprep.subr.bf16.mxu1 %v2542_v7 }
 0xd85   : > { %v1301_v49 = vpop.f32.mrf.mxu0 }
 0xd86   : > { %v1307_v52 = vadd.f32 %v1301_v49, %v2787_v50 }
 0xd87   : > { %v2366_v53 = vpop.f32.mrf.mxu0 }
 0xd88   : > { %1308 = vst.msk [vmem:[%s2861_s29] sm:$0xff] %vm351_vm1, %v1307_v52  ;;  %v2492_v52 = vld [vmem:[%s2960_s3 + $0x58] sm:$0xff]  }
 0xd89   : > { %v1304_v54 = vpop.f32.mrf.mxu0 }
 0xd8b   : > { %v2367_v55 = vpop.f32.mrf.mxu0 }
 0xd8d   : > { %v1416_v56 = vpop.f32.mrf.mxu0  ;;  %v1466_v57 = vpop.f32.mrf.mxu1 }
 0xd8e   : > { %v1472_v58 = vsel %vm1193_vm4, %v1466_v57, -inf }
 0xd8f   : > { %v2382_v59 = vpop.f32.mrf.mxu0  ;;  %1473 = vmax.xlane.f32.xlu1 %v1472_v58  ;;  %v2388_v60 = vpop.f32.mrf.mxu1 }
 0xd91   : > { %v1419_v61 = vpop.f32.mrf.mxu0  ;;  %v1469_v62 = vpop.f32.mrf.mxu1 }
 0xd92   : > { %v1485_v63 = vpack.c.bf16 %v1419_v61, %v1416_v56 }
 0xd93   : > { %v2383_v0 = vpop.f32.mrf.mxu0  ;;  %v2389_v50 = vpop.f32.mrf.mxu1 }
 0xd94   : > { %2391 = vmatpush3.bf16.msra.mxu0 %v1485_v63 }
 0xd95   : > { %2404 = vmatprep.subr.bf16.mxu0 %v2542_v7 }
 0xda0   : > { %1654 = vrot.lane.b32.xlu1 %v2488_v6, %s2544_s18 }
 0xe18   : > { %v1474_v1 = vpop.xlane.xlu1 %1473 }
 0xe19   : > { %v1475_v2 = vsub.f32 %v1466_v57, %v1474_v1  ;;  %v2493_v57 = vld [vmem:[%s2960_s3 + $0x50] sm:$0xff]  }
 0xe1b   : > { %v1476_v3 = vmul.f32 1.442695, %v1475_v2  ;;  %v1912_v2 = vld [vmem:[%s2708_s13] sm:$0xff] (%p2610_p5) }
 0xe1c   : > { %v1655_v19 = vpop.permute.xlu1 %1654  ;;  %1913 = vst [vmem:[%s1879_s24] sm:$0xff] (%p2610_p5), %v1912_v2 }
 0xe1d   : > { %2510 = vpow2.f32 %v1476_v3  ;;  %v1914_v3 = vld [vmem:[%s2708_s13 + $0x8] sm:$0xff] (%p2610_p5) }
 0xe1e   : > { %1915 = vst [vmem:[%s1879_s24 + $0x10] sm:$0xff] (%p2610_p5), %v1914_v3 }
 0xe2a   : > { %v2511_v4 = vpop.eup %2510 }
 0xe2b   : > { %v1478_v5 = vsel %vm1193_vm4, %v2511_v4, 0.0 }
 0xe2c   : > { %1479 = vadd.xlane.f32.xlu0 %v1478_v5 }
 0xe42   : > { %1652 = vrot.lane.b32.xlu0 %v2489_v8, %s2544_s18 }
 0xeb5   : > { %v1480_v10 = vpop.xlane.xlu0 %1479 }
 0xeb6   : > { %2512 = vrcp.f32 %v1480_v10 }
 0xeb9   : > { %v1653_v22 = vpop.permute.xlu0 %1652 }
 0xec3   : > { %v2513_v11 = vpop.eup %2512 }
 0xec4   : > { %v1483_v12 = vmul.f32 %v2513_v11, %v2511_v4  ;;  %v1916_v4 = vld [vmem:[%s2708_s13 + $0x10] sm:$0xff] (%p2610_p5) }
 0xec5   : > { %1917 = vst [vmem:[%s1879_s24 + $0x20] sm:$0xff] (%p2610_p5), %v1916_v4 }
 0xec6   : > { %v1484_v13 = vpack.c.bf16 %v1483_v12, %v1483_v12 }
 0xec8   : > { %2393 = vmatmul.mubr.msk.bf16.vlgmr.msra.gmra.mxu0 %vm1193_vm4, %v1484_v13 }
 0xec9   : > { %2405 = vmatpush3.bf16.msra.mxu0 %v2488_v6  ;;  %2408 = vmatprep.mubr.msk.bf16.mxu0 %vm2543_vm0, %v2542_v7 }
 0xeca   : > { %2406 = vmatprep.subr.bf16.mxu0 %v2542_v7 }
 0xecd   : > { %2407 = vmatpush3.bf16.msra.mxu0 %v2489_v8 }
 0xece   : > { %2420 = vmatprep.subr.bf16.mxu0 %v2542_v7 }
 0xed0   : > { %2409 = vmatmul.mubr.msk.bf16.vlgmr.msra.gmra.mxu0 %vm351_vm1, %v1595_v16 }
 0xed1   : > { %2421 = vmatpush3.bf16.xpose.msra.mxu0 %v1659_v17  ;;  %2422 = vmatprep.mubr.msk.bf16.mxu0 %vm2543_vm0, %v2542_v7 }
 0xed2   : > { %2432 = vmatprep.subr.bf16.mxu0 %v2542_v7 }
 0xf88   : > { %v1523_v26 = vpop.f32.mrf.mxu0 }
 0xf89   : > { %v1529_v18 = vpack.c.bf16 %v1523_v26, %v1523_v26 }
 0xf8a   : > { %v2394_v20 = vpop.f32.mrf.mxu0 }
 0xf8b   : > { %2401 = vmatmul.mubr.msk.bf16.vlgmr.msra.gmra.mxu1 %vm351_vm1, %v1529_v18 }
 0xf8c   : > { %v1526_v21 = vpop.f32.mrf.mxu0  ;;  %2413 = vmatpush3.bf16.msra.mxu1 %v1655_v19  ;;  %2416 = vmatprep.mubr.msk.bf16.mxu1 %vm2543_vm0, %v2542_v7 }
 0xf8d   : > { %2414 = vmatprep.subr.bf16.mxu1 %v2542_v7 }
 0xf8e   : > { %v2395_v23 = vpop.f32.mrf.mxu0 }
 0xf90   : > { %v1645_v24 = vpop.f32.mrf.mxu0  ;;  %2415 = vmatpush3.bf16.msra.mxu1 %v1653_v22 }
 0xf91   : > { %v1707_v25 = vpack.c.bf16 %v1645_v24, %v1645_v24  ;;  %2426 = vmatprep.subr.bf16.mxu1 %v2542_v7 }
 0xf92   : > { %v2410_v27 = vpop.f32.mrf.mxu0 }
 0xf93   : > { %2417 = vmatmul.mubr.msk.bf16.vlgmr.msra.gmra.mxu1 %vm351_vm1, %v1651_v15  ;;  %2423 = vmatmul.mubr.msk.bf16.vlgmr.msra.gmra.mxu0 %vm351_vm1, %v1707_v25 }
 0xf94   : > { %v1648_v28 = vpop.f32.mrf.mxu0  ;;  %2428 = vmatprep.mubr.msk.bf16.mxu1 %vm2543_vm0, %v2542_v7  ;;  %2436 = vmatprep.mubr.msk.bf16.mxu0 %vm2543_vm0, %v2542_v7 }
 0xf95   : > { %2433 = vmatpush3.bf16.msra.mxu0 %v2492_v52 }
 0xf96   : > { %v2411_v29 = vpop.f32.mrf.mxu0  ;;  %2434 = vmatprep.subr.bf16.mxu0 %v2542_v7 }
 0xf99   : > { %2435 = vmatpush3.bf16.msra.mxu0 %v2493_v57 }
0x104b   : > { %v1579_v30 = vpop.f32.mrf.mxu1 }
0x104c   : > { %v1585_v31 = vadd.f32 %v2832_v32, %v1579_v30 }
0x104d   : > { %v2402_v33 = vpop.f32.mrf.mxu1 }
0x104e   : > { %2155 = vst.msk [vmem:[%s2861_s29 + $0x8] sm:$0xff] %vm351_vm1, %v1585_v31 }
0x104f   : > { %v1582_v34 = vpop.f32.mrf.mxu1 }
0x1051   : > { %v2403_v35 = vpop.f32.mrf.mxu1 }
0x1053   : > { %v1695_v37 = vpop.f32.mrf.mxu1  ;;  %v1745_v38 = vpop.f32.mrf.mxu0 }
0x1054   : > { %v1751_v39 = vsel %vm1193_vm4, %v1745_v38, -inf }
0x1055   : > { %1752 = vmax.xlane.f32.xlu1 %v1751_v39  ;;  %v2418_v36 = vpop.f32.mrf.mxu1  ;;  %v2424_v40 = vpop.f32.mrf.mxu0 }
0x1057   : > { %v1698_v41 = vpop.f32.mrf.mxu1  ;;  %v1748_v42 = vpop.f32.mrf.mxu0 }
0x1058   : > { %v1764_v43 = vpack.c.bf16 %v1698_v41, %v1695_v37 }
0x1059   : > { %v2419_v44 = vpop.f32.mrf.mxu1  ;;  %v2425_v45 = vpop.f32.mrf.mxu0 }
0x105a   : > { %2427 = vmatpush3.bf16.msra.mxu1 %v1764_v43 }
0x10de   : > { %v1753_v46 = vpop.xlane.xlu1 %1752 }
0x10df   : > { %v1754_v32 = vsub.f32 %v1745_v38, %v1753_v46 }
0x10e1   : > { %v1755_v47 = vmul.f32 1.442695, %v1754_v32 }
0x10e3   : > { %2514 = vpow2.f32 %v1755_v47 }
0x10f0   : > { %v2515_v48 = vpop.eup %2514 }
0x10f1   : > { %v1757_v49 = vsel %vm1193_vm4, %v2515_v48, 0.0 }
0x10f2   : > { %1758 = vadd.xlane.f32.xlu0 %v1757_v49 }
0x117b   : > { %v1759_v53 = vpop.xlane.xlu0 %1758 }
0x117c   : > { %2516 = vrcp.f32 %v1759_v53 }
0x1189   : > { %v2517_v54 = vpop.eup %2516 }
0x118a   : > { %v1762_v55 = vmul.f32 %v2517_v54, %v2515_v48 }
0x118c   : > { %v1763_v56 = vpack.c.bf16 %v1762_v55, %v1762_v55 }
0x118e   : > { %2429 = vmatmul.mubr.msk.bf16.vlgmr.msra.gmra.mxu1 %vm1193_vm4, %v1763_v56 }
0x124e   : > { %v1802_v58 = vpop.f32.mrf.mxu1 }
0x124f   : > { %v1808_v59 = vpack.c.bf16 %v1802_v58, %v1802_v58 }
0x1250   : > { %v2430_v60 = vpop.f32.mrf.mxu1 }
0x1251   : > { %2437 = vmatmul.mubr.msk.bf16.vlgmr.msra.gmra.mxu0 %vm351_vm1, %v1808_v59 }
0x1252   : > { %v1805_v61 = vpop.f32.mrf.mxu1 }
0x1254   : > { %v2431_v7 = vpop.f32.mrf.mxu1 }
0x1311   : > { %v1858_v62 = vpop.f32.mrf.mxu0 }
0x1312   : > { %v1864_v63 = vadd.f32 %v2884_v14, %v1858_v62 }
0x1313   : > { %v2438_v0 = vpop.f32.mrf.mxu0  ;;  %1877 = sbr.rel (!%p2610_p5) target bundleno = 4888 (0x1318), region = 116 }
0x1314   : > { %2174 = vst.msk [vmem:[%s2861_s29 + $0x10] sm:$0xff] %vm351_vm1, %v1864_v63 }
0x1315   : > { %v1861_v50 = vpop.f32.mrf.mxu0 }
0x1317   : > { %v2439_v1 = vpop.f32.mrf.mxu0 }
0x1318 PF: > { %1923 = sbr.rel (!%p2610_p5) target bundleno = 4893 (0x131d), region = 154  ;;  %s2176_s26 = sshll.u32 (%p2610_p5), %s2591_s21, 3  ;;  %v1958_v5 = vld [vmem:[%s2861_s29] sm:$0xff] (%p2610_p5)  ;;  %v1960_v6 = vld [vmem:[%s2861_s29 + $0x8] sm:$0xff] (%p2610_p5) }
0x1319   : > { %s1925_s28 = scalar_lea.vmem (%p2610_p5), %s2962_s5, %s2176_s26 }
0x131a   : > { %1959 = vst [vmem:[%s1925_s28] sm:$0xff] (%p2610_p5), %v1958_v5  ;;  %1961 = vst [vmem:[%s1925_s28 + $0x10] sm:$0xff] (%p2610_p5), %v1960_v6 }
0x131b   : > { %v1962_v8 = vld [vmem:[%s2861_s29 + $0x10] sm:$0xff] (%p2610_p5) }
0x131c   : > { %1963 = vst [vmem:[%s1925_s28 + $0x20] sm:$0xff] (%p2610_p5), %v1962_v8 }
0x131d PF: > { %p13_p10 = scmp.ge.s32.totalorder %s2594_s22, 4   ;;  %s2965_s18 = smov %s2536_s19 }
0x131e   : > { %s2966_s19 = smov %s2604_s25  ;;  %s2967_s20 = smov %s2594_s22 }
0x131f   :  { %15 = sbr.rel (!%p13_p10) target bundleno = 2 (0x2), region = 261 }

</bundles_post_ra>
